<compile_context>
chip_gen: v6e
topology: v6e:2x2x1
jax: 0.10.0
libtpu: 0.0.40
codegen_flags: <defaults>
</compile_context>

<pallas_src>
import functools

import jax
import jax.numpy as jnp
from jax.experimental import pallas as pl
from jax.experimental.pallas import tpu as pltpu


def encoder_kernel(x_ref, w1_ref, b1_ref, w2_ref, b2_ref, out_ref):
    """One batch tile: out = relu(x @ W1 + b1) @ [W21||W22||0] + [b21||b22||0]."""
    x = x_ref[...]
    # Layer 1 on the MXU with f32 accumulation; bias-add + ReLU on the VPU in f32.
    h = jnp.dot(x, w1_ref[...], preferred_element_type=jnp.float32) + b1_ref[...]
    h = jnp.maximum(h, 0.0)
    # Fused, lane-padded head matmul: one [TB, out_pad] result (mean||logvar||zeros),
    # split for free in the wrapper.
    out = jnp.dot(h.astype(w2_ref.dtype), w2_ref[...],
                  preferred_element_type=jnp.float32) + b2_ref[...]
    out_ref[...] = out.astype(out_ref.dtype)


def prepare_encoder_params(w1, b1, w21, b21, w22, b22, *, use_bf16=True):
    """One-time weight prep; call once at init, NOT per forward pass.

    - fuse the two heads:  W2 = [W21 || W22],  b2 = [b21 || b22]
    - zero-pad hidden to a multiple of 128 lanes
    - zero-pad the fused head output to a multiple of 128 lanes
    - optionally cast matmul weights to bf16 (biases stay f32).
    Padded columns/rows are zero so the extra lanes contribute exactly nothing.
    """
    in_dim, hidden = w1.shape
    z_dim = w21.shape[1]
    hidden_p = 128 * pl.cdiv(hidden, 128)
    out_p = 128 * pl.cdiv(2 * z_dim, 128)

    w2 = jnp.concatenate([w21, w22], axis=1)                    # [hidden, 2*z_dim]
    b2 = jnp.concatenate([b21.reshape(1, -1), b22.reshape(1, -1)], axis=1)

    w1p = jnp.zeros((in_dim, hidden_p), jnp.float32).at[:, :hidden].set(w1)
    b1p = jnp.zeros((1, hidden_p), jnp.float32).at[:, :hidden].set(b1.reshape(1, -1))
    w2p = jnp.zeros((hidden_p, out_p), jnp.float32).at[:hidden, :2 * z_dim].set(w2)
    b2p = jnp.zeros((1, out_p), jnp.float32).at[:, :2 * z_dim].set(b2)

    if use_bf16:
        w1p = w1p.astype(jnp.bfloat16)
        w2p = w2p.astype(jnp.bfloat16)
    # Biases stay f32: they are added post-accumulation on the VPU.
    return w1p, b1p, w2p, b2p


@functools.partial(jax.jit, static_argnames=("z_dim", "block_b"))
def encoder_forward(x, w1, b1, w2, b2, *, z_dim, block_b=None):
    """x: [B, 784] -> (mean [B, z_dim], logvar [B, z_dim]). w1/b1/w2/b2 from
    prepare_encoder_params."""
    B, in_dim = x.shape
    hidden_p = w1.shape[1]
    out_p = w2.shape[1]

    compute_dtype = w1.dtype
    if x.dtype != compute_dtype:
        # For full HBM-bandwidth benefit callers should feed x already in this dtype.
        x = x.astype(compute_dtype)

    # bf16 packs two rows per sublane -> 16-row alignment; f32 -> 8.
    align = 16 if compute_dtype == jnp.bfloat16 else 8

    if block_b is None:
        if B <= 2 * align:
            block_b = align * pl.cdiv(B, align)        # single sublane-aligned tile
        else:
            # Guarantee >= 2 grid blocks (keeps both v7x TensorCores busy) and cap
            # at 1024 rows (~1.6-3.2 MB x tile: per-step overhead ~10%, fits every
            # generation's default scoped-VMEM with double buffering).
            half = align * pl.cdiv(pl.cdiv(B, 2), align)
            block_b = min(1024, half)

    n_blocks = pl.cdiv(B, block_b)
    b_padded = n_blocks * block_b
    if b_padded != B:
        x = jnp.pad(x, ((0, b_padded - B), (0, 0)))

    flops = 2 * b_padded * (in_dim * hidden_p + hidden_p * out_p)
    bytes_accessed = (
        b_padded * in_dim * x.dtype.itemsize
        + w1.size * w1.dtype.itemsize + b1.size * b1.dtype.itemsize
        + w2.size * w2.dtype.itemsize + b2.size * b2.dtype.itemsize
        + b_padded * out_p * 4
    )

    fused = pl.pallas_call(
        encoder_kernel,
        out_shape=jax.ShapeDtypeStruct((b_padded, out_p), jnp.float32),
        grid=(n_blocks,),
        in_specs=[
            pl.BlockSpec((block_b, in_dim), lambda i: (i, 0)),    # x streams with grid
            pl.BlockSpec((in_dim, hidden_p), lambda i: (0, 0)),   # weights stay resident
            pl.BlockSpec((1, hidden_p), lambda i: (0, 0)),
            pl.BlockSpec((hidden_p, out_p), lambda i: (0, 0)),
            pl.BlockSpec((1, out_p), lambda i: (0, 0)),
        ],
        out_specs=pl.BlockSpec((block_b, out_p), lambda i: (i, 0)),
        compiler_params=pltpu.CompilerParams(
            dimension_semantics=("parallel",),                    # shard batch tiles
        ),
        cost_estimate=pl.CostEstimate(
            flops=flops, transcendentals=0, bytes_accessed=bytes_accessed),
    )(x, w1, b1, w2, b2)

    mean = fused[:B, :z_dim]
    logvar = fused[:B, z_dim:2 * z_dim]
    return mean, logvar


def init_linear(key, in_features, out_features):
    # Deterministic init mimicking PyTorch nn.Linear default: U(-1/sqrt(in), 1/sqrt(in)).
    kw, kb = jax.random.split(key)
    bound = 1.0 / jnp.sqrt(jnp.float32(in_features))
    # Stored as [in, out] so the kernel can do x @ W directly.
    w = jax.random.uniform(kw, (in_features, out_features), jnp.float32, -bound, bound)
    b = jax.random.uniform(kb, (1, out_features), jnp.float32, -bound, bound)
    return w, b


if __name__ == "__main__":
    batch = 16
    in_dim = 784          # fixed by nn.Linear(784, hidden_dim)
    hidden_dim = 500      # module default
    z_dim = 20

    key = jax.random.PRNGKey(0)
    kx, k1, k21, k22 = jax.random.split(key, 4)

    x = jax.random.normal(kx, (batch, in_dim), jnp.float32)
    w1, b1 = init_linear(k1, in_dim, hidden_dim)
    w21, b21 = init_linear(k21, hidden_dim, z_dim)
    w22, b22 = init_linear(k22, hidden_dim, z_dim)

    # Pure-JAX reference (same math as the PyTorch forward).
    h_ref = jnp.maximum(x @ w1 + b1, 0.0)
    mean_ref = h_ref @ w21 + b21
    logvar_ref = h_ref @ w22 + b22

    # --- f32 path, explicit block_b=8 -> 2-step grid (exercises the batch pipeline) ---
    p_f32 = prepare_encoder_params(w1, b1, w21, b21, w22, b22, use_bf16=False)
    mean, logvar = encoder_forward(x, *p_f32, z_dim=z_dim, block_b=8)
    jax.block_until_ready((mean, logvar))
    assert mean.shape == (batch, z_dim) and logvar.shape == (batch, z_dim)
    assert jnp.allclose(mean, mean_ref, atol=1e-5, rtol=1e-5)
    assert jnp.allclose(logvar, logvar_ref, atol=1e-5, rtol=1e-5)

    # --- default bf16 path, ragged batch (exercises row padding + bf16 row packing) ---
    p_bf16 = prepare_encoder_params(w1, b1, w21, b21, w22, b22, use_bf16=True)
    x2 = x[:10]
    m2, lv2 = encoder_forward(x2, *p_bf16, z_dim=z_dim)
    jax.block_until_ready((m2, lv2))
    assert m2.shape == (10, z_dim) and lv2.shape == (10, z_dim)
    assert jnp.allclose(m2, mean_ref[:10], atol=5e-2, rtol=5e-2)
    assert jnp.allclose(lv2, logvar_ref[:10], atol=5e-2, rtol=5e-2)

    print("KERNEL_OK")
</pallas_src>

<mosaic_0001>
module attributes {stable_mosaic.version = 11 : i64} {
  func.func @encoder_kernel(%arg0: i32, %arg1: memref<8x784xf32, #tpu.memory_space<vmem>>, %arg2: memref<784x512xf32, #tpu.memory_space<vmem>>, %arg3: memref<1x512xf32, #tpu.memory_space<vmem>>, %arg4: memref<512x128xf32, #tpu.memory_space<vmem>>, %arg5: memref<1x128xf32, #tpu.memory_space<vmem>>, %arg6: memref<8x128xf32, #tpu.memory_space<vmem>>) attributes {dimension_semantics = [#tpu.dimension_semantics<parallel>], iteration_bounds = array<i64: 2>, scalar_prefetch = 0 : i64, scratch_operands = 0 : i64, tpu.core_type = #tpu.core_type<tc>, window_params = [{transform_indices = @transform_0, window_bounds = array<i64: 8, 784>}, {pipeline_mode = #tpu.pipeline_mode<synchronous>, transform_indices = @transform_1, window_bounds = array<i64: 784, 512>}, {pipeline_mode = #tpu.pipeline_mode<synchronous>, transform_indices = @transform_2, window_bounds = array<i64: 1, 512>}, {pipeline_mode = #tpu.pipeline_mode<synchronous>, transform_indices = @transform_3, window_bounds = array<i64: 512, 128>}, {pipeline_mode = #tpu.pipeline_mode<synchronous>, transform_indices = @transform_4, window_bounds = array<i64: 1, 128>}, {transform_indices = @transform_5, window_bounds = array<i64: 8, 128>}]} {
    %c0 = arith.constant 0 : index
    %c0_0 = arith.constant 0 : index
    %0 = vector.load %arg1[%c0, %c0_0] : memref<8x784xf32, #tpu.memory_space<vmem>>, vector<8x784xf32>
    %c0_1 = arith.constant 0 : index
    %c0_2 = arith.constant 0 : index
    %1 = vector.load %arg2[%c0_1, %c0_2] : memref<784x512xf32, #tpu.memory_space<vmem>>, vector<784x512xf32>
    %cst = arith.constant dense<0.000000e+00> : vector<8x512xf32>
    %2 = tpu.matmul %0, %1, %cst {dimension_numbers = #tpu.dot_dimension_numbers<[1], [0], [0], [1], [0, 0, 1, 1], [], []>} : vector<8x784xf32>, vector<784x512xf32>, vector<8x512xf32> -> vector<8x512xf32>
    %c0_3 = arith.constant 0 : index
    %c0_4 = arith.constant 0 : index
    %3 = vector.load %arg3[%c0_3, %c0_4] : memref<1x512xf32, #tpu.memory_space<vmem>>, vector<1x512xf32>
    %4 = vector.broadcast %3 : vector<1x512xf32> to vector<8x512xf32>
    %5 = arith.addf %2, %4 : vector<8x512xf32>
    %cst_5 = arith.constant 0.000000e+00 : f32
    %6 = vector.broadcast %cst_5 : f32 to vector<8x512xf32>
    %7 = arith.maximumf %5, %6 : vector<8x512xf32>
    %c0_6 = arith.constant 0 : index
    %c0_7 = arith.constant 0 : index
    %8 = vector.load %arg4[%c0_6, %c0_7] : memref<512x128xf32, #tpu.memory_space<vmem>>, vector<512x128xf32>
    %cst_8 = arith.constant dense<0.000000e+00> : vector<8x128xf32>
    %9 = tpu.matmul %7, %8, %cst_8 {dimension_numbers = #tpu.dot_dimension_numbers<[1], [0], [0], [1], [0, 0, 1, 1], [], []>} : vector<8x512xf32>, vector<512x128xf32>, vector<8x128xf32> -> vector<8x128xf32>
    %c0_9 = arith.constant 0 : index
    %c0_10 = arith.constant 0 : index
    %10 = vector.load %arg5[%c0_9, %c0_10] : memref<1x128xf32, #tpu.memory_space<vmem>>, vector<1x128xf32>
    %11 = vector.broadcast %10 : vector<1x128xf32> to vector<8x128xf32>
    %12 = arith.addf %9, %11 : vector<8x128xf32>
    %c0_11 = arith.constant 0 : index
    %c0_12 = arith.constant 0 : index
    %13 = vector.load %arg6[%c0_11, %c0_12] : memref<8x128xf32, #tpu.memory_space<vmem>>, vector<8x128xf32>
    tpu.vector_store %arg6[%c0_11, %c0_12], %12 {strides = array<i32>} : memref<8x128xf32, #tpu.memory_space<vmem>>, vector<8x128xf32>,
    return
  }
  func.func @transform_0(%arg0: i32) -> (i32, i32) {
    %c0_i32 = arith.constant 0 : i32
    %c0_i32_0 = arith.constant 0 : i32
    return %arg0, %c0_i32 : i32, i32
  }
  func.func @transform_1(%arg0: i32) -> (i32, i32) {
    %c0_i32 = arith.constant 0 : i32
    %c0_i32_0 = arith.constant 0 : i32
    %c0_i32_1 = arith.constant 0 : i32
    return %c0_i32, %c0_i32_0 : i32, i32
  }
  func.func @transform_2(%arg0: i32) -> (i32, i32) {
    %c0_i32 = arith.constant 0 : i32
    %c0_i32_0 = arith.constant 0 : i32
    %c0_i32_1 = arith.constant 0 : i32
    return %c0_i32, %c0_i32_0 : i32, i32
  }
  func.func @transform_3(%arg0: i32) -> (i32, i32) {
    %c0_i32 = arith.constant 0 : i32
    %c0_i32_0 = arith.constant 0 : i32
    %c0_i32_1 = arith.constant 0 : i32
    return %c0_i32, %c0_i32_0 : i32, i32
  }
  func.func @transform_4(%arg0: i32) -> (i32, i32) {
    %c0_i32 = arith.constant 0 : i32
    %c0_i32_0 = arith.constant 0 : i32
    %c0_i32_1 = arith.constant 0 : i32
    return %c0_i32, %c0_i32_0 : i32, i32
  }
  func.func @transform_5(%arg0: i32) -> (i32, i32) {
    %c0_i32 = arith.constant 0 : i32
    %c0_i32_0 = arith.constant 0 : i32
    return %arg0, %c0_i32 : i32, i32
  }
}

</mosaic_0001>

<bundles_post_ra>
// kernel: encoder_forward.1
= control target key start
LH: loop header
LB: loop body
LE: loop exit
PB: predicated region body
PF: predicated region fallthrough
CT: control target
= control target key end

     0   :  { %10 = vsyncpa [#allocation3], 0  ;;  %s2196_s0 = inlined_call_operand.hbm [shape: f32[16,784], index: 0, kind: input, shape index: {}]   ;;  %s2197_s1 = inlined_call_operand.hbm [shape: f32[784,512], index: 1, kind: input, shape index: {}]   ;;  %s2198_s2 = inlined_call_operand.hbm [shape: f32[1,512], index: 2, kind: input, shape index: {}]   ;;  %s2199_s3 = inlined_call_operand.hbm [shape: f32[512,128], index: 3, kind: input, shape index: {}]   ;;  %s2200_s4 = inlined_call_operand.hbm [shape: f32[1,128], index: 4, kind: input, shape index: {}]   ;;  %s2201_s5 = inlined_call_operand.vmem [shape: f32[16,128], index: 5, kind: output, shape index: {}]  }
   0x1   :  { %12 = vsyncpa [#allocation3 + $0x1], 0 }
   0x2   :  { %13 = vsyncpa [#allocation5], 0 }
   0x3   :  { %14 = vsyncpa [#allocation8], 0  ;;  %s2003_s18 = smov 0   ;;  %s2005_s19 = smov 0  }
   0x4   :  { %s2007_s20 = smov 0   ;;  %s2009_s21 = smov 0  }
   0x5 LB: > { %s1963_s22 = smov [#allocation4]   ;;  %s2024_s24 = sadd.s32 4294967295, %s1961_s21   ;;  %s1961_s21 = sphi %s2009_s21, %s2218_s21   ;;  %s1957_s20 = sphi %s2007_s20, %s2217_s20   ;;  %s1953_s19 = sphi %s2005_s19, %s2216_s19   ;;  %s1949_s18 = sphi %s2003_s18, %s2215_s18  }
   0x6   : > { %s173_s23 = sshll.u32 %s1963_s22, 4  ;;  %p1608_p0 = scmp.ge.s32.totalorder %s1961_s21, 1  ;;  %s174_s23 = int_to_ptr.vmem [resolvable:$true] %s173_s23 }
   0x7   : > { %p2202_p1 = scmp.eq.s32.totalorder %s2024_s24, 0  ;;  %p161_p2 = scmp.lt.s32.totalorder %s1961_s21, 3 }
   0x8   : > { %s1964_s26 = smov [#allocation7]   ;;  %s1965_s29 = smov [#allocation6]  }
   0x9   : > { %p2029_p3 = pnand %p1608_p0, %p161_p2  ;;  %s197_s27 = sshll.u32 %s1964_s26, 4  ;;  %s2041_s27 = int_to_ptr.vmem [resolvable:$true] %s197_s27 }
   0xa   : > { %s2043_s30 = sshll.u32 %s1965_s29, 4  ;;  %s1798_s6 = scalar_lea.vmem %s174_s23, 50176  ;;  %s188_s30 = int_to_ptr.vmem [resolvable:$true] %s2043_s30 }
   0xb   : > { %s2205_s25 = scalar_select %p2029_p3, 1, 0 }
   0xc   : > { %p1717_p4 = pneg %p2029_p3  ;;  %p1799_p7 = scmp.ne.s32.totalorder %s174_s23, %s1798_s6 }
   0xd   : > { %p1806_p10 = scmp.lt.s32.totalorder %s174_s23, %s174_s23  ;;  %p1807_p11 = scmp.lt.s32.totalorder %s1798_s6, %s1798_s6 }
   0xe   : > { %p2037_p5 = pnand %p1717_p4, %p2202_p1 }
   0xf   : > { %p1808_p12 = por %p1807_p11, %p1806_p10 }
  0x10   : > { %p1789_p6 = pneg %p2037_p5 }
  0x12   : > { %p1801_p8 = pnand %p1799_p7, %p1789_p6 }
  0x14   : > { %p1802_p9 = pneg %p1801_p8 }
  0x16   : > { %p1809_p13 = pnand %p1808_p12, %p1802_p9 }
  0x18   : > { %1812 = shalt.err (!%p1809_p13)
}
  0x19   : > { %s1966_s7 = smov 512   ;;  %s1967_s8 = smov 32  }
  0x1a   : > { %1720 = dma.hbm_to_vmem [thread:$0]  (!%p2037_p5), %s2197_s1, 50176, %s174_s23, [#allocation5], %s1966_s7, %s1966_s7, %s1967_s8  }
  0x1b   : > { %s1824_s11 = scalar_lea.vmem %s2041_s27, 8192  ;;  %p1832_p7 = scmp.lt.s32.totalorder %s2041_s27, %s2041_s27 }
  0x1c   : > { %p1825_p0 = scmp.ne.s32.totalorder %s2041_s27, %s1824_s11  ;;  %p1833_p8 = scmp.lt.s32.totalorder %s1824_s11, %s1824_s11 }
  0x1e   : > { %p1827_p2 = pnand %p1825_p0, %p1789_p6  ;;  %p1834_p9 = por %p1833_p8, %p1832_p7 }
  0x20   : > { %p1828_p4 = pneg %p1827_p2 }
  0x22   : > { %p1835_p10 = pnand %p1834_p9, %p1828_p4 }
  0x24   : > { %1838 = shalt.err (!%p1835_p10)
}
  0x25   : > { %s1968_s12 = smov 128   ;;  %s1969_s13 = smov 8  }
  0x26   : > { %1726 = dma.hbm_to_vmem [thread:$0]  (!%p2037_p5), %s2199_s3, 8192, %s2041_s27, [#allocation8], %s1968_s12, %s1968_s12, %s1969_s13  }
  0x27   : > { %s1850_s16 = scalar_lea.vmem %s188_s30, 64  ;;  %p1858_p0 = scmp.lt.s32.totalorder %s188_s30, %s188_s30 }
  0x28   : > { %p1851_p11 = scmp.ne.s32.totalorder %s188_s30, %s1850_s16  ;;  %p1859_p2 = scmp.lt.s32.totalorder %s1850_s16, %s1850_s16 }
  0x2a   : > { %p1853_p12 = pnand %p1851_p11, %p1789_p6  ;;  %p1860_p4 = por %p1859_p2, %p1858_p0 }
  0x2c   : > { %p1854_p13 = pneg %p1853_p12 }
  0x2e   : > { %p1861_p7 = pnand %p1860_p4, %p1854_p13 }
  0x30   : > { %1864 = shalt.err (!%p1861_p7)
}
  0x31   : > { %1723 = dma.hbm_to_vmem [thread:$0]  (!%p2037_p5), %s2198_s2, 64, %s188_s30, [#allocation5]  }
  0x32   : > { %s1970_s23 = smov [#allocation9]  }
  0x33   : > { %s211_s26 = sshll.u32 %s1970_s23, 4  ;;  %s212_s26 = int_to_ptr.vmem [resolvable:$true] %s211_s26 }
  0x34   : > { %s1876_s27 = scalar_lea.vmem %s212_s26, 16  ;;  %s1883_s29 = scalar_lea.vmem %s212_s26, 32 }
  0x35   : > { %p1877_p8 = scmp.ne.s32.totalorder %s212_s26, %s1876_s27  ;;  %p1884_p11 = scmp.lt.s32.totalorder %s212_s26, %s212_s26 }
  0x36   : > { %p1885_p12 = scmp.lt.s32.totalorder %s1883_s29, %s1876_s27 }
  0x37   : > { %p1879_p9 = pnand %p1877_p8, %p1789_p6 }
  0x38   : > { %p1886_p13 = por %p1885_p12, %p1884_p11 }
  0x39   : > { %p1880_p10 = pneg %p1879_p9 }
  0x3b   : > { %p1887_p0 = pnand %p1886_p13, %p1880_p10 }
  0x3d   : > { %1890 = shalt.err (!%p1887_p0)
}
  0x3e   : > { %1729 = dma.hbm_to_vmem [thread:$0]  (!%p2037_p5), %s2200_s4, 16, %s212_s26, [#allocation8]  }
  0x3f   : > { %s2086_s30 = sadd.s32 1, %s1961_s21   ;;  %s27_s28 = sadd.s32 1, %s1957_s20 }
  0x40   : > { %s24_s8 = ssub.s32 %s1961_s21, %s2086_s30  ;;  %p34_p6 = scmp.ne.s32.totalorder %s1957_s20, %s1953_s19 }
  0x41   : > { %p25_p2 = scmp.eq.s32.totalorder %s24_s8, 0  ;;  %p35_p4 = scmp.eq.s32.totalorder %s1961_s21, 0 }
  0x42   : > { %p40_p7 = scmp.ne.s32.totalorder %s1953_s19, %s1949_s18  ;;  %p1738_p8 = scmp.lt.s32.totalorder %s1961_s21, 2 }
  0x43   : > { %s2098_s9 = scalar_select %p25_p2, %s1957_s20, %s27_s28  }
  0x44   : > { %p36_p9 = por %p35_p4, %p34_p6  ;;  %p2102_p10 = por %p2202_p1, %p40_p7 }
  0x45   : > { %s222_s11 = sand.u32 1, %s1957_s20   ;;  %s1697_s12 = smul.u32 896, %s1961_s21 }
  0x46   : > { %s2207_s10 = scalar_select %p2102_p10, 1, 0 }
  0x47   : > { %s1696_s13 = smul.u32 56, %s222_s11  ;;  %p2108_p5 = pnand %p1738_p8, %p36_p9 }
  0x48   : > { %s2115_s18 = scalar_lea.hbm %s2196_s0, %s1697_s12  ;;  %s223_s23 = scalar_lea.sflag [#allocation3], %s222_s11 }
  0x49   : > { %s226_s17 = scalar_lea.vmem [#allocation2], %s1696_s13  ;;  %s1891_s26 = scalar_lea.hbm %s2115_s18, 896 }
  0x4a   : > { %s234_s22 = sshll.u32 %s226_s17, 4  ;;  %p1892_p11 = scmp.ne.s32.totalorder %s2115_s18, %s1891_s26  ;;  %s235_s22 = int_to_ptr.vmem [resolvable:$true] %s234_s22 }
  0x4b   : > { %p1893_p12 = pneg %p2108_p5  ;;  %s1896_s29 = scalar_lea.hbm %s2196_s0, 1792 }
  0x4c   : > { %p1897_p6 = scmp.lt.s32.totalorder %s2115_s18, %s2196_s0  ;;  %p1898_p2 = scmp.lt.s32.totalorder %s1896_s29, %s1891_s26 }
  0x4d   : > { %p1894_p13 = pnand %p1893_p12, %p1892_p11 }
  0x4e   : > { %p1899_p4 = por %p1898_p2, %p1897_p6 }
  0x4f   : > { %p1895_p0 = pneg %p1894_p13 }
  0x51   : > { %p1900_p7 = pnand %p1899_p4, %p1895_p0 }
  0x53   : > { %1903 = shalt.err (!%p1900_p7)
}
  0x54   : > { %s1904_s28 = scalar_lea.vmem %s235_s22, 896  ;;  %s1971_s8 = smov [#allocation2]  }
  0x55   : > { %p1905_p8 = scmp.ne.s32.totalorder %s235_s22, %s1904_s28  ;;  %s1909_s11 = sshll.u32 %s1971_s8, 4  ;;  %s1910_s11 = int_to_ptr.vmem [resolvable:$false] %s1909_s11 }
  0x56   : > { %s1911_s12 = scalar_lea.vmem %s1910_s11, 1792  ;;  %p1912_p11 = scmp.lt.s32.totalorder %s235_s22, %s1910_s11 }
  0x57   : > { %p1907_p9 = pnand %p1905_p8, %p1893_p12  ;;  %p1913_p13 = scmp.lt.s32.totalorder %s1911_s12, %s1904_s28 }
  0x59   : > { %p1908_p1 = pneg %p1907_p9  ;;  %p1914_p10 = por %p1913_p13, %p1912_p11 }
  0x5b   : > { %p1915_p3 = pnand %p1914_p10, %p1908_p1 }
  0x5d   : > { %1918 = shalt.err (!%p1915_p3)
}
  0x5e   : > { %1733 = dma.hbm_to_vmem [thread:$0]  (!%p2108_p5), %s2115_s18, 896, %s235_s22, %s223_s23  }
  0x5f   : > { %p2209_p0 = scmp.ne.s32.totalorder %s2205_s25, 0 }
  0x60   : > { %s245_s13 = sand.u32 (!%p2209_p0), 1, %s1953_s19   ;;  %p2210_p12 = scmp.ne.s32.totalorder (!%p2209_p0), %s2207_s10, 0 }
  0x61   : > { %243 = sbr.rel (%p2209_p0) target bundleno = 715 (0x2cb), region = 40  ;;  %s246_s16 = scalar_lea.sflag (!%p2209_p0), [#allocation3], %s245_s13 }
  0x62   : > { %s1698_s15 = smul.u32 (!%p2209_p0), 56, %s245_s13 }
  0x64   : > { %s2134_s17 = scalar_lea.vmem (!%p2209_p0), [#allocation2], %s1698_s15 }
  0x66   : > { %1936 = dma.done.wait (%p2210_p12), %s246_s16, 896  }
  0x67   : > { %1938 = vsyncadd (%p2210_p12), %s246_s16, 4294966400  ;;  %p2211_p1 = scmp.eq.s32.totalorder %s2024_s24, 0 }
  0x69   : > { %1940 = dma.done.wait (%p2211_p1), [#allocation5], 50240   ;;  %p2212_p3 = pmov %p2211_p1 }
  0x6a   : > { %p2213_p10 = pmov %p2211_p1 }
  0x6b   : > { %1942 = vsyncadd (%p2212_p3), [#allocation5], 4294917056 }
  0x6c   : > { %1944 = dma.done.wait (%p2213_p10), [#allocation8], 8208   ;;  %p2214_p5 = pmov %p2211_p1 }
  0x6d   : > { %v363_v0 = vld [vmem:[#allocation4 + $0x1e8] sm:$0xff]  ;;  %v362_v2 = vld [vmem:[#allocation4 + $0x1e0] sm:$0xff]  ;;  %vm716_vm0 = vcmask 130048   ;;  %p291_p6 = scmp.lt.s32.totalorder %s2024_s24, 1 }
  0x6e   : > { %1946 = vsyncadd (%p2214_p5), [#allocation8], 4294959088  ;;  %v491_v1 = vld [vmem:[#allocation4 + $0x5e8] sm:$0xff]  ;;  %720 = vmatprep.subr.mxu0 %v363_v0  ;;  %v490_v3 = vld [vmem:[#allocation4 + $0x5e0] sm:$0xff] }
  0x6f   : > { %791 = vmatprep.subr.mxu1 %v491_v1  ;;  %v359_v4 = vld [vmem:[#allocation4 + $0x1c8] sm:$0xff]  ;;  %721 = vmatpush1.msra.mxu0 %v362_v2  ;;  %v358_v6 = vld [vmem:[#allocation4 + $0x1c0] sm:$0xff]  ;;  %s2220_s24 = smov (!%p291_p6, %s2024_s24), 1 }
  0x70   : > { %v487_v5 = vld [vmem:[#allocation4 + $0x5c8] sm:$0xff]  ;;  %792 = vmatpush1.msra.mxu1 %v490_v3  ;;  %v486_v7 = vld [vmem:[#allocation4 + $0x5c0] sm:$0xff]  ;;  %722 = vmatprep.subr.mxu0 %v359_v4  ;;  %s1620_s25 = sshll.u32 %s2220_s24, 3 }
  0x71   : > { %v355_v8 = vld [vmem:[#allocation4 + $0x1a8] sm:$0xff]  ;;  %793 = vmatprep.subr.mxu1 %v487_v5  ;;  %v354_v10 = vld [vmem:[#allocation4 + $0x1a0] sm:$0xff]  ;;  %723 = vmatpush1.msra.mxu0 %v358_v6  ;;  %s294_s18 = scalar_lea.vmem %s2201_s5, %s1620_s25 }
  0x72   : > { %v483_v9 = vld [vmem:[#allocation4 + $0x5a8] sm:$0xff]  ;;  %v482_v11 = vld [vmem:[#allocation4 + $0x5a0] sm:$0xff]  ;;  %794 = vmatpush1.msra.mxu1 %v486_v7  ;;  %724 = vmatprep.subr.mxu0 %v355_v8 }
  0x73   : > { %v351_v12 = vld [vmem:[#allocation4 + $0x188] sm:$0xff]  ;;  %795 = vmatprep.subr.mxu1 %v483_v9  ;;  %v350_v14 = vld [vmem:[#allocation4 + $0x180] sm:$0xff]  ;;  %725 = vmatpush1.msra.mxu0 %v354_v10 }
  0x74   : > { %v479_v13 = vld [vmem:[#allocation4 + $0x588] sm:$0xff]  ;;  %v478_v15 = vld [vmem:[#allocation4 + $0x580] sm:$0xff]  ;;  %796 = vmatpush1.msra.mxu1 %v482_v11  ;;  %726 = vmatprep.subr.mxu0 %v351_v12 }
  0x75   : > { %v347_v16 = vld [vmem:[#allocation4 + $0x168] sm:$0xff]  ;;  %797 = vmatprep.subr.mxu1 %v479_v13  ;;  %v346_v18 = vld [vmem:[#allocation4 + $0x160] sm:$0xff]  ;;  %727 = vmatpush1.msra.mxu0 %v350_v14 }
  0x76   : > { %v475_v17 = vld [vmem:[#allocation4 + $0x568] sm:$0xff]  ;;  %v474_v19 = vld [vmem:[#allocation4 + $0x560] sm:$0xff]  ;;  %798 = vmatpush1.msra.mxu1 %v478_v15  ;;  %728 = vmatprep.subr.mxu0 %v347_v16 }
  0x77   : > { %v343_v20 = vld [vmem:[#allocation4 + $0x148] sm:$0xff]  ;;  %799 = vmatprep.subr.mxu1 %v475_v17  ;;  %v342_v22 = vld [vmem:[#allocation4 + $0x140] sm:$0xff]  ;;  %729 = vmatpush1.msra.mxu0 %v346_v18 }
  0x78   : > { %v471_v21 = vld [vmem:[#allocation4 + $0x548] sm:$0xff]  ;;  %v470_v23 = vld [vmem:[#allocation4 + $0x540] sm:$0xff]  ;;  %800 = vmatpush1.msra.mxu1 %v474_v19  ;;  %730 = vmatprep.subr.mxu0 %v343_v20 }
  0x79   : > { %v339_v24 = vld [vmem:[#allocation4 + $0x128] sm:$0xff]  ;;  %801 = vmatprep.subr.mxu1 %v471_v21  ;;  %v338_v26 = vld [vmem:[#allocation4 + $0x120] sm:$0xff]  ;;  %731 = vmatpush1.msra.mxu0 %v342_v22 }
  0x7a   : > { %v467_v25 = vld [vmem:[#allocation4 + $0x528] sm:$0xff]  ;;  %v466_v27 = vld [vmem:[#allocation4 + $0x520] sm:$0xff]  ;;  %802 = vmatpush1.msra.mxu1 %v470_v23  ;;  %732 = vmatprep.subr.mxu0 %v339_v24 }
  0x7b   : > { %v335_v28 = vld [vmem:[#allocation4 + $0x108] sm:$0xff]  ;;  %803 = vmatprep.subr.mxu1 %v467_v25  ;;  %v334_v30 = vld [vmem:[#allocation4 + $0x100] sm:$0xff]  ;;  %733 = vmatpush1.msra.mxu0 %v338_v26 }
  0x7c   : > { %v463_v29 = vld [vmem:[#allocation4 + $0x508] sm:$0xff]  ;;  %v462_v31 = vld [vmem:[#allocation4 + $0x500] sm:$0xff]  ;;  %804 = vmatpush1.msra.mxu1 %v466_v27  ;;  %734 = vmatprep.subr.mxu0 %v335_v28 }
  0x7d   : > { %v331_v32 = vld [vmem:[#allocation4 + $0xe8] sm:$0xff]  ;;  %805 = vmatprep.subr.mxu1 %v463_v29  ;;  %v330_v34 = vld [vmem:[#allocation4 + $0xe0] sm:$0xff]  ;;  %735 = vmatpush1.msra.mxu0 %v334_v30 }
  0x7e   : > { %v459_v33 = vld [vmem:[#allocation4 + $0x4e8] sm:$0xff]  ;;  %v458_v35 = vld [vmem:[#allocation4 + $0x4e0] sm:$0xff]  ;;  %806 = vmatpush1.msra.mxu1 %v462_v31  ;;  %736 = vmatprep.subr.mxu0 %v331_v32 }
  0x7f   : > { %v327_v36 = vld [vmem:[#allocation4 + $0xc8] sm:$0xff]  ;;  %807 = vmatprep.subr.mxu1 %v459_v33  ;;  %v326_v38 = vld [vmem:[#allocation4 + $0xc0] sm:$0xff]  ;;  %737 = vmatpush1.msra.mxu0 %v330_v34 }
  0x80   : > { %v455_v37 = vld [vmem:[#allocation4 + $0x4c8] sm:$0xff]  ;;  %v454_v39 = vld [vmem:[#allocation4 + $0x4c0] sm:$0xff]  ;;  %808 = vmatpush1.msra.mxu1 %v458_v35  ;;  %738 = vmatprep.subr.mxu0 %v327_v36 }
  0x81   : > { %v323_v40 = vld [vmem:[#allocation4 + $0xa8] sm:$0xff]  ;;  %809 = vmatprep.subr.mxu1 %v455_v37  ;;  %v322_v42 = vld [vmem:[#allocation4 + $0xa0] sm:$0xff]  ;;  %739 = vmatpush1.msra.mxu0 %v326_v38 }
  0x82   : > { %v451_v41 = vld [vmem:[#allocation4 + $0x4a8] sm:$0xff]  ;;  %v450_v43 = vld [vmem:[#allocation4 + $0x4a0] sm:$0xff]  ;;  %810 = vmatpush1.msra.mxu1 %v454_v39  ;;  %740 = vmatprep.subr.mxu0 %v323_v40 }
  0x83   : > { %v319_v44 = vld [vmem:[#allocation4 + $0x88] sm:$0xff]  ;;  %811 = vmatprep.subr.mxu1 %v451_v41  ;;  %v318_v46 = vld [vmem:[#allocation4 + $0x80] sm:$0xff]  ;;  %741 = vmatpush1.msra.mxu0 %v322_v42 }
  0x84   : > { %v447_v45 = vld [vmem:[#allocation4 + $0x488] sm:$0xff]  ;;  %v446_v47 = vld [vmem:[#allocation4 + $0x480] sm:$0xff]  ;;  %812 = vmatpush1.msra.mxu1 %v450_v43  ;;  %742 = vmatprep.subr.mxu0 %v319_v44 }
  0x85   : > { %v315_v48 = vld [vmem:[#allocation4 + $0x68] sm:$0xff]  ;;  %813 = vmatprep.subr.mxu1 %v447_v45  ;;  %v314_v50 = vld [vmem:[#allocation4 + $0x60] sm:$0xff]  ;;  %743 = vmatpush1.msra.mxu0 %v318_v46 }
  0x86   : > { %v443_v49 = vld [vmem:[#allocation4 + $0x468] sm:$0xff]  ;;  %v442_v51 = vld [vmem:[#allocation4 + $0x460] sm:$0xff]  ;;  %814 = vmatpush1.msra.mxu1 %v446_v47  ;;  %744 = vmatprep.subr.mxu0 %v315_v48 }
  0x87   : > { %v311_v52 = vld [vmem:[#allocation4 + $0x48] sm:$0xff]  ;;  %815 = vmatprep.subr.mxu1 %v443_v49  ;;  %v310_v54 = vld [vmem:[#allocation4 + $0x40] sm:$0xff]  ;;  %745 = vmatpush1.msra.mxu0 %v314_v50 }
  0x88   : > { %v439_v53 = vld [vmem:[#allocation4 + $0x448] sm:$0xff]  ;;  %v438_v55 = vld [vmem:[#allocation4 + $0x440] sm:$0xff]  ;;  %816 = vmatpush1.msra.mxu1 %v442_v51  ;;  %746 = vmatprep.subr.mxu0 %v311_v52 }
  0x89   : > { %v307_v56 = vld [vmem:[#allocation4 + $0x28] sm:$0xff]  ;;  %817 = vmatprep.subr.mxu1 %v439_v53  ;;  %v306_v58 = vld [vmem:[#allocation4 + $0x20] sm:$0xff]  ;;  %747 = vmatpush1.msra.mxu0 %v310_v54 }
  0x8a   : > { %v435_v57 = vld [vmem:[#allocation4 + $0x428] sm:$0xff]  ;;  %v434_v59 = vld [vmem:[#allocation4 + $0x420] sm:$0xff]  ;;  %818 = vmatpush1.msra.mxu1 %v438_v55  ;;  %748 = vmatprep.subr.mxu0 %v307_v56 }
  0x8b   : > { %v303_v60 = vld [vmem:[#allocation4 + $0x8] sm:$0xff]  ;;  %819 = vmatprep.subr.mxu1 %v435_v57  ;;  %v302_v62 = vld [vmem:[#allocation4] sm:$0xff]  ;;  %749 = vmatpush1.msra.mxu0 %v306_v58 }
  0x8c   : > { %v431_v61 = vld [vmem:[#allocation4 + $0x408] sm:$0xff]  ;;  %v430_v63 = vld [vmem:[#allocation4 + $0x400] sm:$0xff]  ;;  %820 = vmatpush1.msra.mxu1 %v434_v59  ;;  %750 = vmatprep.subr.mxu0 %v303_v60 }
  0x8d   : > { %v427_v0 = vld [vmem:[#allocation4 + $0x3e8] sm:$0xff]  ;;  %821 = vmatprep.subr.mxu1 %v431_v61  ;;  %v426_v2 = vld [vmem:[#allocation4 + $0x3e0] sm:$0xff]  ;;  %751 = vmatpush1.msra.mxu0 %v302_v62 }
  0x8e   : > { %v555_v1 = vld [vmem:[#allocation4 + $0x7e8] sm:$0xff]  ;;  %v554_v3 = vld [vmem:[#allocation4 + $0x7e0] sm:$0xff]  ;;  %822 = vmatpush1.msra.mxu1 %v430_v63  ;;  %752 = vmatprep.subr.mxu0 %v427_v0  ;;  %v2149_v63 = vld [vmem:[%s2134_s17 + $0x8] sm:$0xff] }
  0x8f   : > { %v423_v4 = vld [vmem:[#allocation4 + $0x3c8] sm:$0xff]  ;;  %823 = vmatprep.subr.mxu1 %v555_v1  ;;  %v422_v6 = vld [vmem:[#allocation4 + $0x3c0] sm:$0xff]  ;;  %753 = vmatpush2.msra.mxu0 %v426_v2 }
  0x90   : > { %v551_v5 = vld [vmem:[#allocation4 + $0x7c8] sm:$0xff]  ;;  %v550_v7 = vld [vmem:[#allocation4 + $0x7c0] sm:$0xff]  ;;  %824 = vmatpush2.msra.mxu1 %v554_v3  ;;  %754 = vmatprep.subr.mxu0 %v423_v4 }
  0x91   : > { %v419_v8 = vld [vmem:[#allocation4 + $0x3a8] sm:$0xff]  ;;  %825 = vmatprep.subr.mxu1 %v551_v5  ;;  %v418_v10 = vld [vmem:[#allocation4 + $0x3a0] sm:$0xff]  ;;  %755 = vmatpush2.msra.mxu0 %v422_v6 }
  0x92   : > { %v547_v9 = vld [vmem:[#allocation4 + $0x7a8] sm:$0xff]  ;;  %v546_v11 = vld [vmem:[#allocation4 + $0x7a0] sm:$0xff]  ;;  %826 = vmatpush2.msra.mxu1 %v550_v7  ;;  %756 = vmatprep.subr.mxu0 %v419_v8 }
  0x93   : > { %v415_v12 = vld [vmem:[#allocation4 + $0x388] sm:$0xff]  ;;  %827 = vmatprep.subr.mxu1 %v547_v9  ;;  %v414_v14 = vld [vmem:[#allocation4 + $0x380] sm:$0xff]  ;;  %757 = vmatpush2.msra.mxu0 %v418_v10 }
  0x94   : > { %v543_v13 = vld [vmem:[#allocation4 + $0x788] sm:$0xff]  ;;  %v542_v15 = vld [vmem:[#allocation4 + $0x780] sm:$0xff]  ;;  %828 = vmatpush2.msra.mxu1 %v546_v11  ;;  %758 = vmatprep.subr.mxu0 %v415_v12 }
  0x95   : > { %v411_v16 = vld [vmem:[#allocation4 + $0x368] sm:$0xff]  ;;  %829 = vmatprep.subr.mxu1 %v543_v13  ;;  %v410_v18 = vld [vmem:[#allocation4 + $0x360] sm:$0xff]  ;;  %759 = vmatpush2.msra.mxu0 %v414_v14  ;;  %v365_v14 = vld [vmem:[#allocation4 + $0x1f8] sm:$0xff] }
  0x96   : > { %v539_v17 = vld [vmem:[#allocation4 + $0x768] sm:$0xff]  ;;  %v538_v19 = vld [vmem:[#allocation4 + $0x760] sm:$0xff]  ;;  %830 = vmatpush2.msra.mxu1 %v542_v15  ;;  %760 = vmatprep.subr.mxu0 %v411_v16  ;;  %v364_v16 = vld [vmem:[#allocation4 + $0x1f0] sm:$0xff] }
  0x97   : > { %v407_v20 = vld [vmem:[#allocation4 + $0x348] sm:$0xff]  ;;  %831 = vmatprep.subr.mxu1 %v539_v17  ;;  %v406_v22 = vld [vmem:[#allocation4 + $0x340] sm:$0xff]  ;;  %761 = vmatpush2.msra.mxu0 %v410_v18  ;;  %v1972_v17 = vmov 0.0  }
  0x98   : > { %v535_v21 = vld [vmem:[#allocation4 + $0x748] sm:$0xff]  ;;  %v534_v23 = vld [vmem:[#allocation4 + $0x740] sm:$0xff]  ;;  %832 = vmatpush2.msra.mxu1 %v538_v19  ;;  %762 = vmatprep.subr.mxu0 %v407_v20  ;;  %v361_v19 = vld [vmem:[#allocation4 + $0x1d8] sm:$0xff] }
  0x99   : > { %v403_v24 = vld [vmem:[#allocation4 + $0x328] sm:$0xff]  ;;  %833 = vmatprep.subr.mxu1 %v535_v21  ;;  %v402_v26 = vld [vmem:[#allocation4 + $0x320] sm:$0xff]  ;;  %763 = vmatpush2.msra.mxu0 %v406_v22  ;;  %v360_v21 = vld [vmem:[#allocation4 + $0x1d0] sm:$0xff] }
  0x9a   : > { %v531_v25 = vld [vmem:[#allocation4 + $0x728] sm:$0xff]  ;;  %v530_v27 = vld [vmem:[#allocation4 + $0x720] sm:$0xff]  ;;  %834 = vmatpush2.msra.mxu1 %v534_v23  ;;  %764 = vmatprep.subr.mxu0 %v403_v24  ;;  %v357_v23 = vld [vmem:[#allocation4 + $0x1b8] sm:$0xff] }
  0x9b   : > { %v399_v28 = vld [vmem:[#allocation4 + $0x308] sm:$0xff]  ;;  %835 = vmatprep.subr.mxu1 %v531_v25  ;;  %v398_v30 = vld [vmem:[#allocation4 + $0x300] sm:$0xff]  ;;  %765 = vmatpush2.msra.mxu0 %v402_v26  ;;  %v356_v25 = vld [vmem:[#allocation4 + $0x1b0] sm:$0xff] }
  0x9c   : > { %v527_v29 = vld [vmem:[#allocation4 + $0x708] sm:$0xff]  ;;  %v526_v31 = vld [vmem:[#allocation4 + $0x700] sm:$0xff]  ;;  %836 = vmatpush2.msra.mxu1 %v530_v27  ;;  %766 = vmatprep.subr.mxu0 %v399_v28  ;;  %v353_v27 = vld [vmem:[#allocation4 + $0x198] sm:$0xff] }
  0x9d   : > { %v395_v32 = vld [vmem:[#allocation4 + $0x2e8] sm:$0xff]  ;;  %837 = vmatprep.subr.mxu1 %v527_v29  ;;  %v394_v34 = vld [vmem:[#allocation4 + $0x2e0] sm:$0xff]  ;;  %767 = vmatpush2.msra.mxu0 %v398_v30  ;;  %v352_v29 = vld [vmem:[#allocation4 + $0x190] sm:$0xff] }
  0x9e   : > { %v523_v33 = vld [vmem:[#allocation4 + $0x6e8] sm:$0xff]  ;;  %v522_v35 = vld [vmem:[#allocation4 + $0x6e0] sm:$0xff]  ;;  %838 = vmatpush2.msra.mxu1 %v526_v31  ;;  %768 = vmatprep.subr.mxu0 %v395_v32  ;;  %v349_v31 = vld [vmem:[#allocation4 + $0x178] sm:$0xff] }
  0x9f   : > { %v391_v36 = vld [vmem:[#allocation4 + $0x2c8] sm:$0xff]  ;;  %839 = vmatprep.subr.mxu1 %v523_v33  ;;  %v390_v38 = vld [vmem:[#allocation4 + $0x2c0] sm:$0xff]  ;;  %769 = vmatpush2.msra.mxu0 %v394_v34  ;;  %v348_v33 = vld [vmem:[#allocation4 + $0x170] sm:$0xff] }
  0xa0   : > { %v519_v37 = vld [vmem:[#allocation4 + $0x6c8] sm:$0xff]  ;;  %v518_v39 = vld [vmem:[#allocation4 + $0x6c0] sm:$0xff]  ;;  %840 = vmatpush2.msra.mxu1 %v522_v35  ;;  %770 = vmatprep.subr.mxu0 %v391_v36  ;;  %v345_v35 = vld [vmem:[#allocation4 + $0x158] sm:$0xff] }
  0xa1   : > { %v387_v40 = vld [vmem:[#allocation4 + $0x2a8] sm:$0xff]  ;;  %841 = vmatprep.subr.mxu1 %v519_v37  ;;  %v386_v42 = vld [vmem:[#allocation4 + $0x2a0] sm:$0xff]  ;;  %771 = vmatpush2.msra.mxu0 %v390_v38  ;;  %v344_v37 = vld [vmem:[#allocation4 + $0x150] sm:$0xff] }
  0xa2   : > { %v515_v41 = vld [vmem:[#allocation4 + $0x6a8] sm:$0xff]  ;;  %v514_v43 = vld [vmem:[#allocation4 + $0x6a0] sm:$0xff]  ;;  %842 = vmatpush2.msra.mxu1 %v518_v39  ;;  %772 = vmatprep.subr.mxu0 %v387_v40  ;;  %v341_v39 = vld [vmem:[#allocation4 + $0x138] sm:$0xff] }
  0xa3   : > { %v383_v44 = vld [vmem:[#allocation4 + $0x288] sm:$0xff]  ;;  %843 = vmatprep.subr.mxu1 %v515_v41  ;;  %v382_v46 = vld [vmem:[#allocation4 + $0x280] sm:$0xff]  ;;  %773 = vmatpush2.msra.mxu0 %v386_v42  ;;  %v340_v41 = vld [vmem:[#allocation4 + $0x130] sm:$0xff] }
  0xa4   : > { %v511_v45 = vld [vmem:[#allocation4 + $0x688] sm:$0xff]  ;;  %v510_v47 = vld [vmem:[#allocation4 + $0x680] sm:$0xff]  ;;  %844 = vmatpush2.msra.mxu1 %v514_v43  ;;  %774 = vmatprep.subr.mxu0 %v383_v44  ;;  %v337_v43 = vld [vmem:[#allocation4 + $0x118] sm:$0xff] }
  0xa5   : > { %v379_v48 = vld [vmem:[#allocation4 + $0x268] sm:$0xff]  ;;  %845 = vmatprep.subr.mxu1 %v511_v45  ;;  %v378_v50 = vld [vmem:[#allocation4 + $0x260] sm:$0xff]  ;;  %775 = vmatpush2.msra.mxu0 %v382_v46  ;;  %v336_v45 = vld [vmem:[#allocation4 + $0x110] sm:$0xff] }
  0xa6   : > { %v507_v49 = vld [vmem:[#allocation4 + $0x668] sm:$0xff]  ;;  %v506_v51 = vld [vmem:[#allocation4 + $0x660] sm:$0xff]  ;;  %846 = vmatpush2.msra.mxu1 %v510_v47  ;;  %776 = vmatprep.subr.mxu0 %v379_v48  ;;  %v333_v47 = vld [vmem:[#allocation4 + $0xf8] sm:$0xff] }
  0xa7   : > { %v375_v52 = vld [vmem:[#allocation4 + $0x248] sm:$0xff]  ;;  %847 = vmatprep.subr.mxu1 %v507_v49  ;;  %v374_v54 = vld [vmem:[#allocation4 + $0x240] sm:$0xff]  ;;  %777 = vmatpush2.msra.mxu0 %v378_v50  ;;  %v332_v49 = vld [vmem:[#allocation4 + $0xf0] sm:$0xff] }
  0xa8   : > { %v503_v53 = vld [vmem:[#allocation4 + $0x648] sm:$0xff]  ;;  %v502_v55 = vld [vmem:[#allocation4 + $0x640] sm:$0xff]  ;;  %848 = vmatpush2.msra.mxu1 %v506_v51  ;;  %778 = vmatprep.subr.mxu0 %v375_v52  ;;  %v329_v51 = vld [vmem:[#allocation4 + $0xd8] sm:$0xff] }
  0xa9   : > { %v371_v56 = vld [vmem:[#allocation4 + $0x228] sm:$0xff]  ;;  %849 = vmatprep.subr.mxu1 %v503_v53  ;;  %v370_v58 = vld [vmem:[#allocation4 + $0x220] sm:$0xff]  ;;  %779 = vmatpush2.msra.mxu0 %v374_v54  ;;  %v328_v53 = vld [vmem:[#allocation4 + $0xd0] sm:$0xff] }
  0xaa   : > { %v499_v57 = vld [vmem:[#allocation4 + $0x628] sm:$0xff]  ;;  %v498_v59 = vld [vmem:[#allocation4 + $0x620] sm:$0xff]  ;;  %850 = vmatpush2.msra.mxu1 %v502_v55  ;;  %780 = vmatprep.subr.mxu0 %v371_v56  ;;  %v325_v55 = vld [vmem:[#allocation4 + $0xb8] sm:$0xff] }
  0xab   : > { %v367_v60 = vld [vmem:[#allocation4 + $0x208] sm:$0xff]  ;;  %851 = vmatprep.subr.mxu1 %v499_v57  ;;  %v366_v62 = vld [vmem:[#allocation4 + $0x200] sm:$0xff]  ;;  %781 = vmatpush2.msra.mxu0 %v370_v58  ;;  %v324_v57 = vld [vmem:[#allocation4 + $0xb0] sm:$0xff] }
  0xac   : > { %v495_v61 = vld [vmem:[#allocation4 + $0x608] sm:$0xff]  ;;  %852 = vmatpush2.msra.mxu1 %v498_v59  ;;  %v494_v0 = vld [vmem:[#allocation4 + $0x600] sm:$0xff]  ;;  %782 = vmatprep.subr.mxu0 %v367_v60  ;;  %v321_v59 = vld [vmem:[#allocation4 + $0x98] sm:$0xff] }
  0xad   : > { %v298_v1 = vld [vmem:[%s2134_s17 + $0x18] sm:$0xff]  ;;  %853 = vmatprep.subr.mxu1 %v495_v61  ;;  %v2153_v2 = vld [vmem:[%s2134_s17] sm:$0xff]  ;;  %v297_v3 = vld [vmem:[%s2134_s17 + $0x10] sm:$0xff]  ;;  %783 = vmatpush2.msra.mxu0 %v366_v62 }
  0xae   : > { %784 = vmatprep.mubr.f32.mxu0 %v2149_v63  ;;  %v619_v4 = vld [vmem:[#allocation4 + $0x9e8] sm:$0xff]  ;;  %854 = vmatpush2.msra.mxu1 %v494_v0  ;;  %v618_v6 = vld [vmem:[#allocation4 + $0x9e0] sm:$0xff]  ;;  %v320_v61 = vld [vmem:[#allocation4 + $0x90] sm:$0xff] }
  0xaf   : > { %v691_v5 = vld [vmem:[#allocation4 + $0xc28] sm:$0xff]  ;;  %855 = vmatprep.mubr.f32.mxu1 %v298_v1  ;;  %v690_v7 = vld [vmem:[#allocation4 + $0xc20] sm:$0xff]  ;;  %785 = vmatmul.mubr.f32.vlgmr.msra.gmra.mxu0 %v2153_v2  ;;  %v317_v0 = vld [vmem:[#allocation4 + $0x78] sm:$0xff] }
  0xb0   : > { %856 = vmatmul.mubr.f32.vlgmr.msra.gmra.mxu1 %v297_v3  ;;  %v615_v8 = vld [vmem:[#allocation4 + $0x9c8] sm:$0xff]  ;;  %862 = vmatprep.subr.mxu0 %v619_v4  ;;  %v614_v10 = vld [vmem:[#allocation4 + $0x9c0] sm:$0xff]  ;;  %v316_v3 = vld [vmem:[#allocation4 + $0x70] sm:$0xff] }
  0xb1   : > { %v687_v9 = vld [vmem:[#allocation4 + $0xc08] sm:$0xff]  ;;  %961 = vmatprep.subr.mxu1 %v691_v5  ;;  %v686_v11 = vld [vmem:[#allocation4 + $0xc00] sm:$0xff]  ;;  %863 = vmatpush1.msra.mxu0 %v618_v6  ;;  %v313_v5 = vld [vmem:[#allocation4 + $0x58] sm:$0xff] }
  0xb2   : > { %962 = vmatpush1.msra.mxu1 %v690_v7  ;;  %v611_v12 = vld [vmem:[#allocation4 + $0x9a8] sm:$0xff]  ;;  %864 = vmatprep.subr.mxu0 %v615_v8  ;;  %v301_v13 = vld [vmem:[%s2134_s17 + $0x30] sm:$0xff]  ;;  %v312_v7 = vld [vmem:[#allocation4 + $0x50] sm:$0xff] }
  0xb3   : > { %963 = vmatprep.subr.mxu1 %v687_v9  ;;  %865 = vmatpush1.msra.mxu0 %v614_v10  ;;  %v610_v15 = vld [vmem:[#allocation4 + $0x9a0] sm:$0xff]  ;;  %v607_v18 = vld [vmem:[#allocation4 + $0x988] sm:$0xff]  ;;  %v309_v9 = vld [vmem:[#allocation4 + $0x38] sm:$0xff] }
  0xb4   : > { %964 = vmatpush1.msra.mxu1 %v686_v11  ;;  %997 = vmatprep.mubr.f32.mxu1 %v1972_v17  ;;  %v606_v20 = vld [vmem:[#allocation4 + $0x980] sm:$0xff]  ;;  %v603_v22 = vld [vmem:[#allocation4 + $0x968] sm:$0xff]  ;;  %v308_v11 = vld [vmem:[#allocation4 + $0x30] sm:$0xff] }
  0xb5   : > { %866 = vmatprep.subr.mxu0 %v611_v12  ;;  %1621 = vmatmul.mubr.msk.f32.vlgmr.msra.gmra.mxu1 %vm716_vm0, %v301_v13  ;;  %v602_v24 = vld [vmem:[#allocation4 + $0x960] sm:$0xff]  ;;  %v599_v26 = vld [vmem:[#allocation4 + $0x948] sm:$0xff]  ;;  %v305_v13 = vld [vmem:[#allocation4 + $0x18] sm:$0xff] }
  0xb6   : > { %1004 = vmatprep.subr.mxu1 %v365_v14  ;;  %867 = vmatpush1.msra.mxu0 %v610_v15  ;;  %v598_v28 = vld [vmem:[#allocation4 + $0x940] sm:$0xff]  ;;  %v595_v30 = vld [vmem:[#allocation4 + $0x928] sm:$0xff]  ;;  %v304_v15 = vld [vmem:[#allocation4 + $0x10] sm:$0xff] }
  0xb7   : > { %1005 = vmatpush1.msra.mxu1 %v364_v16  ;;  %868 = vmatprep.subr.mxu0 %v607_v18  ;;  %v594_v32 = vld [vmem:[#allocation4 + $0x920] sm:$0xff]  ;;  %v591_v34 = vld [vmem:[#allocation4 + $0x908] sm:$0xff]  ;;  %v429_v18 = vld [vmem:[#allocation4 + $0x3f8] sm:$0xff] }
  0xb8   : > { %1006 = vmatprep.subr.mxu1 %v361_v19  ;;  %869 = vmatpush1.msra.mxu0 %v606_v20  ;;  %v590_v36 = vld [vmem:[#allocation4 + $0x900] sm:$0xff]  ;;  %v587_v38 = vld [vmem:[#allocation4 + $0x8e8] sm:$0xff]  ;;  %v428_v20 = vld [vmem:[#allocation4 + $0x3f0] sm:$0xff] }
  0xb9   : > { %1007 = vmatpush1.msra.mxu1 %v360_v21  ;;  %870 = vmatprep.subr.mxu0 %v603_v22  ;;  %v586_v40 = vld [vmem:[#allocation4 + $0x8e0] sm:$0xff]  ;;  %v583_v42 = vld [vmem:[#allocation4 + $0x8c8] sm:$0xff]  ;;  %v425_v22 = vld [vmem:[#allocation4 + $0x3d8] sm:$0xff] }
  0xba   : > { %1008 = vmatprep.subr.mxu1 %v357_v23  ;;  %871 = vmatpush1.msra.mxu0 %v602_v24  ;;  %v582_v44 = vld [vmem:[#allocation4 + $0x8c0] sm:$0xff]  ;;  %v579_v46 = vld [vmem:[#allocation4 + $0x8a8] sm:$0xff]  ;;  %v424_v24 = vld [vmem:[#allocation4 + $0x3d0] sm:$0xff] }
  0xbb   : > { %1009 = vmatpush1.msra.mxu1 %v356_v25  ;;  %872 = vmatprep.subr.mxu0 %v599_v26  ;;  %v578_v48 = vld [vmem:[#allocation4 + $0x8a0] sm:$0xff]  ;;  %v575_v50 = vld [vmem:[#allocation4 + $0x888] sm:$0xff]  ;;  %v421_v26 = vld [vmem:[#allocation4 + $0x3b8] sm:$0xff] }
  0xbc   : > { %1010 = vmatprep.subr.mxu1 %v353_v27  ;;  %873 = vmatpush1.msra.mxu0 %v598_v28  ;;  %v574_v52 = vld [vmem:[#allocation4 + $0x880] sm:$0xff]  ;;  %v571_v54 = vld [vmem:[#allocation4 + $0x868] sm:$0xff]  ;;  %v420_v28 = vld [vmem:[#allocation4 + $0x3b0] sm:$0xff] }
  0xbd   : > { %1011 = vmatpush1.msra.mxu1 %v352_v29  ;;  %874 = vmatprep.subr.mxu0 %v595_v30  ;;  %v570_v56 = vld [vmem:[#allocation4 + $0x860] sm:$0xff]  ;;  %v567_v58 = vld [vmem:[#allocation4 + $0x848] sm:$0xff]  ;;  %v417_v30 = vld [vmem:[#allocation4 + $0x398] sm:$0xff] }
  0xbe   : > { %1012 = vmatprep.subr.mxu1 %v349_v31  ;;  %875 = vmatpush1.msra.mxu0 %v594_v32  ;;  %v566_v60 = vld [vmem:[#allocation4 + $0x840] sm:$0xff]  ;;  %v563_v62 = vld [vmem:[#allocation4 + $0x828] sm:$0xff]  ;;  %v416_v32 = vld [vmem:[#allocation4 + $0x390] sm:$0xff] }
  0xbf   : > { %1013 = vmatpush1.msra.mxu1 %v348_v33  ;;  %876 = vmatprep.subr.mxu0 %v591_v34  ;;  %v562_v1 = vld [vmem:[#allocation4 + $0x820] sm:$0xff]  ;;  %v559_v4 = vld [vmem:[#allocation4 + $0x808] sm:$0xff]  ;;  %v413_v34 = vld [vmem:[#allocation4 + $0x378] sm:$0xff] }
  0xc0   : > { %1014 = vmatprep.subr.mxu1 %v345_v35  ;;  %877 = vmatpush1.msra.mxu0 %v590_v36  ;;  %v558_v6 = vld [vmem:[#allocation4 + $0x800] sm:$0xff]  ;;  %v683_v8 = vld [vmem:[#allocation4 + $0xbe8] sm:$0xff]  ;;  %v412_v36 = vld [vmem:[#allocation4 + $0x370] sm:$0xff] }
  0xc1   : > { %1015 = vmatpush1.msra.mxu1 %v344_v37  ;;  %878 = vmatprep.subr.mxu0 %v587_v38  ;;  %v682_v10 = vld [vmem:[#allocation4 + $0xbe0] sm:$0xff]  ;;  %v679_v12 = vld [vmem:[#allocation4 + $0xbc8] sm:$0xff]  ;;  %v409_v38 = vld [vmem:[#allocation4 + $0x358] sm:$0xff] }
  0xc2   : > { %1016 = vmatprep.subr.mxu1 %v341_v39  ;;  %879 = vmatpush1.msra.mxu0 %v586_v40  ;;  %v678_v14 = vld [vmem:[#allocation4 + $0xbc0] sm:$0xff]  ;;  %v675_v16 = vld [vmem:[#allocation4 + $0xba8] sm:$0xff]  ;;  %v408_v40 = vld [vmem:[#allocation4 + $0x350] sm:$0xff] }
  0xc3   : > { %1017 = vmatpush1.msra.mxu1 %v340_v41  ;;  %880 = vmatprep.subr.mxu0 %v583_v42  ;;  %v674_v19 = vld [vmem:[#allocation4 + $0xba0] sm:$0xff]  ;;  %v671_v21 = vld [vmem:[#allocation4 + $0xb88] sm:$0xff]  ;;  %v405_v42 = vld [vmem:[#allocation4 + $0x338] sm:$0xff] }
  0xc4   : > { %1018 = vmatprep.subr.mxu1 %v337_v43  ;;  %881 = vmatpush1.msra.mxu0 %v582_v44  ;;  %v670_v23 = vld [vmem:[#allocation4 + $0xb80] sm:$0xff]  ;;  %v667_v25 = vld [vmem:[#allocation4 + $0xb68] sm:$0xff]  ;;  %v404_v44 = vld [vmem:[#allocation4 + $0x330] sm:$0xff] }
  0xc5   : > { %1019 = vmatpush1.msra.mxu1 %v336_v45  ;;  %882 = vmatprep.subr.mxu0 %v579_v46  ;;  %v666_v27 = vld [vmem:[#allocation4 + $0xb60] sm:$0xff]  ;;  %v663_v29 = vld [vmem:[#allocation4 + $0xb48] sm:$0xff]  ;;  %v401_v46 = vld [vmem:[#allocation4 + $0x318] sm:$0xff] }
  0xc6   : > { %1020 = vmatprep.subr.mxu1 %v333_v47  ;;  %883 = vmatpush1.msra.mxu0 %v578_v48  ;;  %v662_v31 = vld [vmem:[#allocation4 + $0xb40] sm:$0xff]  ;;  %v659_v33 = vld [vmem:[#allocation4 + $0xb28] sm:$0xff]  ;;  %v400_v48 = vld [vmem:[#allocation4 + $0x310] sm:$0xff] }
  0xc7   : > { %1021 = vmatpush1.msra.mxu1 %v332_v49  ;;  %884 = vmatprep.subr.mxu0 %v575_v50  ;;  %v658_v35 = vld [vmem:[#allocation4 + $0xb20] sm:$0xff]  ;;  %v655_v37 = vld [vmem:[#allocation4 + $0xb08] sm:$0xff]  ;;  %v397_v50 = vld [vmem:[#allocation4 + $0x2f8] sm:$0xff] }
  0xc8   : > { %1022 = vmatprep.subr.mxu1 %v329_v51  ;;  %885 = vmatpush1.msra.mxu0 %v574_v52  ;;  %v654_v39 = vld [vmem:[#allocation4 + $0xb00] sm:$0xff]  ;;  %v651_v41 = vld [vmem:[#allocation4 + $0xae8] sm:$0xff]  ;;  %v396_v52 = vld [vmem:[#allocation4 + $0x2f0] sm:$0xff] }
  0xc9   : > { %1023 = vmatpush1.msra.mxu1 %v328_v53  ;;  %886 = vmatprep.subr.mxu0 %v571_v54  ;;  %v650_v43 = vld [vmem:[#allocation4 + $0xae0] sm:$0xff]  ;;  %v647_v45 = vld [vmem:[#allocation4 + $0xac8] sm:$0xff]  ;;  %v393_v54 = vld [vmem:[#allocation4 + $0x2d8] sm:$0xff] }
  0xca   : > { %1024 = vmatprep.subr.mxu1 %v325_v55  ;;  %887 = vmatpush1.msra.mxu0 %v570_v56  ;;  %v646_v47 = vld [vmem:[#allocation4 + $0xac0] sm:$0xff]  ;;  %v643_v49 = vld [vmem:[#allocation4 + $0xaa8] sm:$0xff]  ;;  %v392_v56 = vld [vmem:[#allocation4 + $0x2d0] sm:$0xff] }
  0xcb   : > { %1025 = vmatpush1.msra.mxu1 %v324_v57  ;;  %888 = vmatprep.subr.mxu0 %v567_v58  ;;  %v642_v51 = vld [vmem:[#allocation4 + $0xaa0] sm:$0xff]  ;;  %v639_v53 = vld [vmem:[#allocation4 + $0xa88] sm:$0xff]  ;;  %v389_v58 = vld [vmem:[#allocation4 + $0x2b8] sm:$0xff] }
  0xcc   : > { %1026 = vmatprep.subr.mxu1 %v321_v59  ;;  %889 = vmatpush1.msra.mxu0 %v566_v60  ;;  %v638_v55 = vld [vmem:[#allocation4 + $0xa80] sm:$0xff]  ;;  %v635_v57 = vld [vmem:[#allocation4 + $0xa68] sm:$0xff]  ;;  %v388_v60 = vld [vmem:[#allocation4 + $0x2b0] sm:$0xff] }
  0xcd   : > { %1027 = vmatpush1.msra.mxu1 %v320_v61  ;;  %890 = vmatprep.subr.mxu0 %v563_v62  ;;  %v634_v59 = vld [vmem:[#allocation4 + $0xa60] sm:$0xff]  ;;  %v631_v61 = vld [vmem:[#allocation4 + $0xa48] sm:$0xff]  ;;  %v385_v62 = vld [vmem:[#allocation4 + $0x298] sm:$0xff] }
  0xce   : > { %1028 = vmatprep.subr.mxu1 %v317_v0  ;;  %891 = vmatpush1.msra.mxu0 %v562_v1  ;;  %v630_v0 = vld [vmem:[#allocation4 + $0xa40] sm:$0xff]  ;;  %v384_v1 = vld [vmem:[#allocation4 + $0x290] sm:$0xff] }
  0xcf   : > { %1029 = vmatpush1.msra.mxu1 %v316_v3  ;;  %892 = vmatprep.subr.mxu0 %v559_v4  ;;  %v627_v3 = vld [vmem:[#allocation4 + $0xa28] sm:$0xff]  ;;  %v381_v4 = vld [vmem:[#allocation4 + $0x278] sm:$0xff] }
  0xd0   : > { %1030 = vmatprep.subr.mxu1 %v313_v5  ;;  %893 = vmatpush1.msra.mxu0 %v558_v6  ;;  %v626_v5 = vld [vmem:[#allocation4 + $0xa20] sm:$0xff]  ;;  %v380_v6 = vld [vmem:[#allocation4 + $0x270] sm:$0xff] }
  0xd1   : > { %1031 = vmatpush1.msra.mxu1 %v312_v7  ;;  %894 = vmatprep.subr.mxu0 %v683_v8  ;;  %v623_v7 = vld [vmem:[#allocation4 + $0xa08] sm:$0xff]  ;;  %v377_v8 = vld [vmem:[#allocation4 + $0x258] sm:$0xff] }
  0xd2   : > { %1032 = vmatprep.subr.mxu1 %v309_v9  ;;  %895 = vmatpush2.msra.mxu0 %v682_v10  ;;  %v622_v9 = vld [vmem:[#allocation4 + $0xa00] sm:$0xff]  ;;  %v2162_v10 = vld [vmem:[%s2134_s17 + $0x28] sm:$0xff] }
  0xd3   : > { %1033 = vmatpush1.msra.mxu1 %v308_v11  ;;  %896 = vmatprep.subr.mxu0 %v679_v12  ;;  %v376_v11 = vld [vmem:[#allocation4 + $0x250] sm:$0xff] }
  0xd4   : > { %1034 = vmatprep.subr.mxu1 %v305_v13  ;;  %897 = vmatpush2.msra.mxu0 %v678_v14  ;;  %v2165_v12 = vld [vmem:[%s2134_s17 + $0x20] sm:$0xff]  ;;  %v373_v13 = vld [vmem:[#allocation4 + $0x238] sm:$0xff] }
  0xd5   : > { %1035 = vmatpush1.msra.mxu1 %v304_v15  ;;  %898 = vmatprep.subr.mxu0 %v675_v16  ;;  %v493_v14 = vld [vmem:[#allocation4 + $0x5f8] sm:$0xff]  ;;  %v372_v15 = vld [vmem:[#allocation4 + $0x230] sm:$0xff] }
  0xd6   : > { %1036 = vmatprep.subr.mxu1 %v429_v18  ;;  %899 = vmatpush2.msra.mxu0 %v674_v19  ;;  %v492_v16 = vld [vmem:[#allocation4 + $0x5f0] sm:$0xff]  ;;  %v369_v18 = vld [vmem:[#allocation4 + $0x218] sm:$0xff] }
  0xd7   : > { %1037 = vmatpush2.msra.mxu1 %v428_v20  ;;  %900 = vmatprep.subr.mxu0 %v671_v21  ;;  %v489_v19 = vld [vmem:[#allocation4 + $0x5d8] sm:$0xff]  ;;  %v368_v20 = vld [vmem:[#allocation4 + $0x210] sm:$0xff] }
  0xd8   : > { %1038 = vmatprep.subr.mxu1 %v425_v22  ;;  %901 = vmatpush2.msra.mxu0 %v670_v23  ;;  %v488_v21 = vld [vmem:[#allocation4 + $0x5d0] sm:$0xff]  ;;  %v485_v22 = vld [vmem:[#allocation4 + $0x5b8] sm:$0xff] }
  0xd9   : > { %1039 = vmatpush2.msra.mxu1 %v424_v24  ;;  %902 = vmatprep.subr.mxu0 %v667_v25  ;;  %v621_v23 = vld [vmem:[#allocation4 + $0x9f8] sm:$0xff]  ;;  %v484_v24 = vld [vmem:[#allocation4 + $0x5b0] sm:$0xff] }
  0xda   : > { %1040 = vmatprep.subr.mxu1 %v421_v26  ;;  %903 = vmatpush2.msra.mxu0 %v666_v27  ;;  %v620_v25 = vld [vmem:[#allocation4 + $0x9f0] sm:$0xff]  ;;  %v481_v26 = vld [vmem:[#allocation4 + $0x598] sm:$0xff] }
  0xdb   : > { %1041 = vmatpush2.msra.mxu1 %v420_v28  ;;  %904 = vmatprep.subr.mxu0 %v663_v29  ;;  %v617_v27 = vld [vmem:[#allocation4 + $0x9d8] sm:$0xff]  ;;  %v480_v28 = vld [vmem:[#allocation4 + $0x590] sm:$0xff] }
  0xdc   : > { %1042 = vmatprep.subr.mxu1 %v417_v30  ;;  %905 = vmatpush2.msra.mxu0 %v662_v31  ;;  %v616_v29 = vld [vmem:[#allocation4 + $0x9d0] sm:$0xff]  ;;  %v477_v30 = vld [vmem:[#allocation4 + $0x578] sm:$0xff] }
  0xdd   : > { %1043 = vmatpush2.msra.mxu1 %v416_v32  ;;  %906 = vmatprep.subr.mxu0 %v659_v33  ;;  %v613_v31 = vld [vmem:[#allocation4 + $0x9b8] sm:$0xff]  ;;  %v476_v32 = vld [vmem:[#allocation4 + $0x570] sm:$0xff] }
  0xde   : > { %1044 = vmatprep.subr.mxu1 %v413_v34  ;;  %907 = vmatpush2.msra.mxu0 %v658_v35  ;;  %v612_v33 = vld [vmem:[#allocation4 + $0x9b0] sm:$0xff]  ;;  %v609_v34 = vld [vmem:[#allocation4 + $0x998] sm:$0xff] }
  0xdf   : > { %1045 = vmatpush2.msra.mxu1 %v412_v36  ;;  %908 = vmatprep.subr.mxu0 %v655_v37  ;;  %v608_v35 = vld [vmem:[#allocation4 + $0x990] sm:$0xff]  ;;  %v469_v36 = vld [vmem:[#allocation4 + $0x538] sm:$0xff] }
  0xe0   : > { %1046 = vmatprep.subr.mxu1 %v409_v38  ;;  %909 = vmatpush2.msra.mxu0 %v654_v39  ;;  %v605_v37 = vld [vmem:[#allocation4 + $0x978] sm:$0xff]  ;;  %v468_v38 = vld [vmem:[#allocation4 + $0x530] sm:$0xff] }
  0xe1   : > { %1047 = vmatpush2.msra.mxu1 %v408_v40  ;;  %910 = vmatprep.subr.mxu0 %v651_v41  ;;  %v604_v39 = vld [vmem:[#allocation4 + $0x970] sm:$0xff]  ;;  %v465_v40 = vld [vmem:[#allocation4 + $0x518] sm:$0xff] }
  0xe2   : > { %1048 = vmatprep.subr.mxu1 %v405_v42  ;;  %911 = vmatpush2.msra.mxu0 %v650_v43  ;;  %v601_v41 = vld [vmem:[#allocation4 + $0x958] sm:$0xff]  ;;  %v464_v42 = vld [vmem:[#allocation4 + $0x510] sm:$0xff] }
  0xe3   : > { %1049 = vmatpush2.msra.mxu1 %v404_v44  ;;  %912 = vmatprep.subr.mxu0 %v647_v45  ;;  %v600_v43 = vld [vmem:[#allocation4 + $0x950] sm:$0xff]  ;;  %v461_v44 = vld [vmem:[#allocation4 + $0x4f8] sm:$0xff] }
  0xe4   : > { %1050 = vmatprep.subr.mxu1 %v401_v46  ;;  %913 = vmatpush2.msra.mxu0 %v646_v47  ;;  %v597_v45 = vld [vmem:[#allocation4 + $0x938] sm:$0xff]  ;;  %v460_v46 = vld [vmem:[#allocation4 + $0x4f0] sm:$0xff] }
  0xe5   : > { %1051 = vmatpush2.msra.mxu1 %v400_v48  ;;  %914 = vmatprep.subr.mxu0 %v643_v49  ;;  %v596_v47 = vld [vmem:[#allocation4 + $0x930] sm:$0xff]  ;;  %v457_v48 = vld [vmem:[#allocation4 + $0x4d8] sm:$0xff] }
  0xe6   : > { %1052 = vmatprep.subr.mxu1 %v397_v50  ;;  %915 = vmatpush2.msra.mxu0 %v642_v51  ;;  %v593_v49 = vld [vmem:[#allocation4 + $0x918] sm:$0xff]  ;;  %v456_v50 = vld [vmem:[#allocation4 + $0x4d0] sm:$0xff] }
  0xe7   : > { %1053 = vmatpush2.msra.mxu1 %v396_v52  ;;  %916 = vmatprep.subr.mxu0 %v639_v53  ;;  %v592_v51 = vld [vmem:[#allocation4 + $0x910] sm:$0xff]  ;;  %v453_v52 = vld [vmem:[#allocation4 + $0x4b8] sm:$0xff] }
  0xe8   : > { %1054 = vmatprep.subr.mxu1 %v393_v54  ;;  %917 = vmatpush2.msra.mxu0 %v638_v55  ;;  %v589_v53 = vld [vmem:[#allocation4 + $0x8f8] sm:$0xff]  ;;  %v452_v54 = vld [vmem:[#allocation4 + $0x4b0] sm:$0xff] }
  0xe9   : > { %1055 = vmatpush2.msra.mxu1 %v392_v56  ;;  %918 = vmatprep.subr.mxu0 %v635_v57  ;;  %v588_v55 = vld [vmem:[#allocation4 + $0x8f0] sm:$0xff]  ;;  %v449_v56 = vld [vmem:[#allocation4 + $0x498] sm:$0xff] }
  0xea   : > { %1056 = vmatprep.subr.mxu1 %v389_v58  ;;  %919 = vmatpush2.msra.mxu0 %v634_v59  ;;  %v585_v57 = vld [vmem:[#allocation4 + $0x8d8] sm:$0xff]  ;;  %v448_v58 = vld [vmem:[#allocation4 + $0x490] sm:$0xff] }
  0xeb   : > { %1057 = vmatpush2.msra.mxu1 %v388_v60  ;;  %920 = vmatprep.subr.mxu0 %v631_v61  ;;  %v584_v59 = vld [vmem:[#allocation4 + $0x8d0] sm:$0xff]  ;;  %v445_v60 = vld [vmem:[#allocation4 + $0x478] sm:$0xff] }
  0xec   : > { %1058 = vmatprep.subr.mxu1 %v385_v62  ;;  %921 = vmatpush2.msra.mxu0 %v630_v0  ;;  %v581_v61 = vld [vmem:[#allocation4 + $0x8b8] sm:$0xff]  ;;  %v444_v62 = vld [vmem:[#allocation4 + $0x470] sm:$0xff] }
  0xed   : > { %1059 = vmatpush2.msra.mxu1 %v384_v1  ;;  %922 = vmatprep.subr.mxu0 %v627_v3  ;;  %v580_v0 = vld [vmem:[#allocation4 + $0x8b0] sm:$0xff]  ;;  %v441_v1 = vld [vmem:[#allocation4 + $0x458] sm:$0xff] }
  0xee   : > { %1060 = vmatprep.subr.mxu1 %v381_v4  ;;  %923 = vmatpush2.msra.mxu0 %v626_v5  ;;  %v577_v3 = vld [vmem:[#allocation4 + $0x898] sm:$0xff]  ;;  %v440_v4 = vld [vmem:[#allocation4 + $0x450] sm:$0xff] }
  0xef   : > { %1061 = vmatpush2.msra.mxu1 %v380_v6  ;;  %924 = vmatprep.subr.mxu0 %v623_v7  ;;  %v576_v5 = vld [vmem:[#allocation4 + $0x890] sm:$0xff]  ;;  %v437_v6 = vld [vmem:[#allocation4 + $0x438] sm:$0xff] }
  0xf0   : > { %1062 = vmatprep.subr.mxu1 %v377_v8  ;;  %925 = vmatpush2.msra.mxu0 %v622_v9  ;;  %v573_v7 = vld [vmem:[#allocation4 + $0x878] sm:$0xff]  ;;  %v436_v8 = vld [vmem:[#allocation4 + $0x430] sm:$0xff] }
  0xf1   : > { %926 = vmatprep.mubr.f32.mxu0 %v2162_v10  ;;  %1063 = vmatpush2.msra.mxu1 %v376_v11  ;;  %v572_v9 = vld [vmem:[#allocation4 + $0x870] sm:$0xff]  ;;  %v433_v11 = vld [vmem:[#allocation4 + $0x418] sm:$0xff] }
  0xf2   : > { %927 = vmatmul.mubr.f32.vlgmr.msra.gmra.mxu0 %v2165_v12  ;;  %1064 = vmatprep.subr.mxu1 %v373_v13  ;;  %v569_v13 = vld [vmem:[#allocation4 + $0x858] sm:$0xff] }
  0xf3   : > { %1075 = vmatprep.subr.mxu0 %v493_v14  ;;  %1065 = vmatpush2.msra.mxu1 %v372_v15  ;;  %v432_v14 = vld [vmem:[#allocation4 + $0x410] sm:$0xff] }
  0xf4   : > { %1076 = vmatpush1.msra.mxu0 %v492_v16  ;;  %1066 = vmatprep.subr.mxu1 %v369_v18  ;;  %v568_v15 = vld [vmem:[#allocation4 + $0x850] sm:$0xff]  ;;  %v557_v16 = vld [vmem:[#allocation4 + $0x7f8] sm:$0xff] }
  0xf5   : > { %1077 = vmatprep.subr.mxu0 %v489_v19  ;;  %1067 = vmatpush2.msra.mxu1 %v368_v20  ;;  %v565_v18 = vld [vmem:[#allocation4 + $0x838] sm:$0xff]  ;;  %v556_v19 = vld [vmem:[#allocation4 + $0x7f0] sm:$0xff] }
  0xf6   : > { %1068 = vmatprep.mubr.f32.mxu1 %v2149_v63  ;;  %1078 = vmatpush1.msra.mxu0 %v488_v21  ;;  %v473_v63 = vld [vmem:[#allocation4 + $0x558] sm:$0xff]  ;;  %v564_v20 = vld [vmem:[#allocation4 + $0x830] sm:$0xff] }
  0xf7   : > { %1069 = vmatmul.mubr.f32.vlgmr.msra.gmra.mxu1 %v2153_v2  ;;  %1079 = vmatprep.subr.mxu0 %v485_v22  ;;  %v472_v2 = vld [vmem:[#allocation4 + $0x550] sm:$0xff]  ;;  %v553_v21 = vld [vmem:[#allocation4 + $0x7d8] sm:$0xff] }
  0xf8   : > { %1146 = vmatprep.subr.mxu1 %v621_v23  ;;  %1080 = vmatpush1.msra.mxu0 %v484_v24  ;;  %v561_v22 = vld [vmem:[#allocation4 + $0x818] sm:$0xff]  ;;  %v552_v23 = vld [vmem:[#allocation4 + $0x7d0] sm:$0xff] }
  0xf9   : > { %1147 = vmatpush1.msra.mxu1 %v620_v25  ;;  %1081 = vmatprep.subr.mxu0 %v481_v26  ;;  %v560_v24 = vld [vmem:[#allocation4 + $0x810] sm:$0xff]  ;;  %v549_v25 = vld [vmem:[#allocation4 + $0x7b8] sm:$0xff] }
  0xfa   : > { %1148 = vmatprep.subr.mxu1 %v617_v27  ;;  %1082 = vmatpush1.msra.mxu0 %v480_v28  ;;  %v685_v26 = vld [vmem:[#allocation4 + $0xbf8] sm:$0xff]  ;;  %v548_v27 = vld [vmem:[#allocation4 + $0x7b0] sm:$0xff] }
  0xfb   : > { %1149 = vmatpush1.msra.mxu1 %v616_v29  ;;  %1083 = vmatprep.subr.mxu0 %v477_v30  ;;  %v684_v28 = vld [vmem:[#allocation4 + $0xbf0] sm:$0xff]  ;;  %v545_v29 = vld [vmem:[#allocation4 + $0x798] sm:$0xff] }
  0xfc   : > { %1150 = vmatprep.subr.mxu1 %v613_v31  ;;  %1084 = vmatpush1.msra.mxu0 %v476_v32  ;;  %v681_v30 = vld [vmem:[#allocation4 + $0xbd8] sm:$0xff]  ;;  %v544_v31 = vld [vmem:[#allocation4 + $0x790] sm:$0xff] }
  0xfd   : > { %1151 = vmatpush1.msra.mxu1 %v612_v33  ;;  %1085 = vmatprep.subr.mxu0 %v473_v63  ;;  %v680_v32 = vld [vmem:[#allocation4 + $0xbd0] sm:$0xff]  ;;  %v541_v33 = vld [vmem:[#allocation4 + $0x778] sm:$0xff] }
  0xfe   : > { %1152 = vmatprep.subr.mxu1 %v609_v34  ;;  %1086 = vmatpush1.msra.mxu0 %v472_v2  ;;  %v677_v63 = vld [vmem:[#allocation4 + $0xbb8] sm:$0xff]  ;;  %v540_v34 = vld [vmem:[#allocation4 + $0x770] sm:$0xff] }
  0xff   : > { %1153 = vmatpush1.msra.mxu1 %v608_v35  ;;  %1087 = vmatprep.subr.mxu0 %v469_v36  ;;  %v676_v2 = vld [vmem:[#allocation4 + $0xbb0] sm:$0xff]  ;;  %v537_v35 = vld [vmem:[#allocation4 + $0x758] sm:$0xff] }
 0x100   : > { %1154 = vmatprep.subr.mxu1 %v605_v37  ;;  %1088 = vmatpush1.msra.mxu0 %v468_v38  ;;  %v673_v36 = vld [vmem:[#allocation4 + $0xb98] sm:$0xff]  ;;  %v536_v37 = vld [vmem:[#allocation4 + $0x750] sm:$0xff] }
 0x101   : > { %1155 = vmatpush1.msra.mxu1 %v604_v39  ;;  %1089 = vmatprep.subr.mxu0 %v465_v40  ;;  %v672_v38 = vld [vmem:[#allocation4 + $0xb90] sm:$0xff]  ;;  %v533_v39 = vld [vmem:[#allocation4 + $0x738] sm:$0xff] }
 0x102   : > { %1156 = vmatprep.subr.mxu1 %v601_v41  ;;  %1090 = vmatpush1.msra.mxu0 %v464_v42  ;;  %v669_v40 = vld [vmem:[#allocation4 + $0xb78] sm:$0xff]  ;;  %v532_v41 = vld [vmem:[#allocation4 + $0x730] sm:$0xff] }
 0x103   : > { %1157 = vmatpush1.msra.mxu1 %v600_v43  ;;  %1091 = vmatprep.subr.mxu0 %v461_v44  ;;  %v668_v42 = vld [vmem:[#allocation4 + $0xb70] sm:$0xff]  ;;  %v529_v43 = vld [vmem:[#allocation4 + $0x718] sm:$0xff] }
 0x104   : > { %1158 = vmatprep.subr.mxu1 %v597_v45  ;;  %1092 = vmatpush1.msra.mxu0 %v460_v46  ;;  %v665_v44 = vld [vmem:[#allocation4 + $0xb58] sm:$0xff]  ;;  %v528_v45 = vld [vmem:[#allocation4 + $0x710] sm:$0xff] }
 0x105   : > { %1159 = vmatpush1.msra.mxu1 %v596_v47  ;;  %1093 = vmatprep.subr.mxu0 %v457_v48  ;;  %v664_v46 = vld [vmem:[#allocation4 + $0xb50] sm:$0xff]  ;;  %v525_v47 = vld [vmem:[#allocation4 + $0x6f8] sm:$0xff] }
 0x106   : > { %1160 = vmatprep.subr.mxu1 %v593_v49  ;;  %1094 = vmatpush1.msra.mxu0 %v456_v50  ;;  %v661_v48 = vld [vmem:[#allocation4 + $0xb38] sm:$0xff]  ;;  %v524_v49 = vld [vmem:[#allocation4 + $0x6f0] sm:$0xff] }
 0x107   : > { %1161 = vmatpush1.msra.mxu1 %v592_v51  ;;  %1095 = vmatprep.subr.mxu0 %v453_v52  ;;  %v660_v50 = vld [vmem:[#allocation4 + $0xb30] sm:$0xff]  ;;  %v521_v51 = vld [vmem:[#allocation4 + $0x6d8] sm:$0xff] }
 0x108   : > { %1162 = vmatprep.subr.mxu1 %v589_v53  ;;  %1096 = vmatpush1.msra.mxu0 %v452_v54  ;;  %v657_v52 = vld [vmem:[#allocation4 + $0xb18] sm:$0xff]  ;;  %v520_v53 = vld [vmem:[#allocation4 + $0x6d0] sm:$0xff] }
 0x109   : > { %1163 = vmatpush1.msra.mxu1 %v588_v55  ;;  %1097 = vmatprep.subr.mxu0 %v449_v56  ;;  %v656_v54 = vld [vmem:[#allocation4 + $0xb10] sm:$0xff]  ;;  %v517_v55 = vld [vmem:[#allocation4 + $0x6b8] sm:$0xff] }
 0x10a   : > { %1164 = vmatprep.subr.mxu1 %v585_v57  ;;  %1098 = vmatpush1.msra.mxu0 %v448_v58  ;;  %v653_v56 = vld [vmem:[#allocation4 + $0xaf8] sm:$0xff]  ;;  %v516_v57 = vld [vmem:[#allocation4 + $0x6b0] sm:$0xff] }
 0x10b   : > { %1165 = vmatpush1.msra.mxu1 %v584_v59  ;;  %1099 = vmatprep.subr.mxu0 %v445_v60  ;;  %v652_v58 = vld [vmem:[#allocation4 + $0xaf0] sm:$0xff]  ;;  %v513_v59 = vld [vmem:[#allocation4 + $0x698] sm:$0xff] }
 0x10c   : > { %1166 = vmatprep.subr.mxu1 %v581_v61  ;;  %1100 = vmatpush1.msra.mxu0 %v444_v62  ;;  %v649_v60 = vld [vmem:[#allocation4 + $0xad8] sm:$0xff]  ;;  %v512_v61 = vld [vmem:[#allocation4 + $0x690] sm:$0xff] }
 0x10d   : > { %1167 = vmatpush1.msra.mxu1 %v580_v0  ;;  %1101 = vmatprep.subr.mxu0 %v441_v1  ;;  %v648_v62 = vld [vmem:[#allocation4 + $0xad0] sm:$0xff]  ;;  %v509_v0 = vld [vmem:[#allocation4 + $0x678] sm:$0xff] }
 0x10e   : > { %1168 = vmatprep.subr.mxu1 %v577_v3  ;;  %1102 = vmatpush1.msra.mxu0 %v440_v4  ;;  %v645_v1 = vld [vmem:[#allocation4 + $0xab8] sm:$0xff]  ;;  %v508_v3 = vld [vmem:[#allocation4 + $0x670] sm:$0xff] }
 0x10f   : > { %1169 = vmatpush1.msra.mxu1 %v576_v5  ;;  %1103 = vmatprep.subr.mxu0 %v437_v6  ;;  %v644_v4 = vld [vmem:[#allocation4 + $0xab0] sm:$0xff]  ;;  %v505_v5 = vld [vmem:[#allocation4 + $0x658] sm:$0xff] }
 0x110   : > { %1170 = vmatprep.subr.mxu1 %v573_v7  ;;  %1104 = vmatpush1.msra.mxu0 %v436_v8  ;;  %v641_v6 = vld [vmem:[#allocation4 + $0xa98] sm:$0xff]  ;;  %v504_v7 = vld [vmem:[#allocation4 + $0x650] sm:$0xff] }
 0x111   : > { %1171 = vmatpush1.msra.mxu1 %v572_v9  ;;  %1105 = vmatprep.subr.mxu0 %v433_v11  ;;  %v640_v8 = vld [vmem:[#allocation4 + $0xa90] sm:$0xff]  ;;  %v501_v9 = vld [vmem:[#allocation4 + $0x638] sm:$0xff] }
 0x112   : > { %1172 = vmatprep.subr.mxu1 %v569_v13  ;;  %1106 = vmatpush1.msra.mxu0 %v432_v14  ;;  %v637_v11 = vld [vmem:[#allocation4 + $0xa78] sm:$0xff]  ;;  %v500_v13 = vld [vmem:[#allocation4 + $0x630] sm:$0xff] }
 0x113   : > { %1173 = vmatpush1.msra.mxu1 %v568_v15  ;;  %1107 = vmatprep.subr.mxu0 %v557_v16  ;;  %v636_v14 = vld [vmem:[#allocation4 + $0xa70] sm:$0xff]  ;;  %v497_v15 = vld [vmem:[#allocation4 + $0x618] sm:$0xff] }
 0x114   : > { %1174 = vmatprep.subr.mxu1 %v565_v18  ;;  %1108 = vmatpush2.msra.mxu0 %v556_v19  ;;  %v633_v16 = vld [vmem:[#allocation4 + $0xa58] sm:$0xff]  ;;  %v496_v18 = vld [vmem:[#allocation4 + $0x610] sm:$0xff] }
 0x115   : > { %1175 = vmatpush1.msra.mxu1 %v564_v20  ;;  %1109 = vmatprep.subr.mxu0 %v553_v21  ;;  %v632_v19 = vld [vmem:[#allocation4 + $0xa50] sm:$0xff]  ;;  %v629_v20 = vld [vmem:[#allocation4 + $0xa38] sm:$0xff] }
 0x116   : > { %1176 = vmatprep.subr.mxu1 %v561_v22  ;;  %1110 = vmatpush2.msra.mxu0 %v552_v23  ;;  %v693_v21 = vld [vmem:[#allocation4 + $0xc38] sm:$0xff]  ;;  %v1784_v22 = vld [vmem:[%s2134_s17 + $0x18] sm:$0xff]  ;;  %v628_v23 = vld [vmem:[#allocation4 + $0xa30] sm:$0xff] }
 0x117   : > { %1177 = vmatpush1.msra.mxu1 %v560_v24  ;;  %1111 = vmatprep.subr.mxu0 %v549_v25  ;;  %v692_v24 = vld [vmem:[#allocation4 + $0xc30] sm:$0xff]  ;;  %v1785_v25 = vld [vmem:[%s2134_s17 + $0x10] sm:$0xff] }
 0x118   : > { %1178 = vmatprep.subr.mxu1 %v685_v26  ;;  %1112 = vmatpush2.msra.mxu0 %v548_v27  ;;  %v625_v26 = vld [vmem:[#allocation4 + $0xa18] sm:$0xff] }
 0x119   : > { %1179 = vmatpush2.msra.mxu1 %v684_v28  ;;  %1113 = vmatprep.subr.mxu0 %v545_v29  ;;  %v689_v27 = vld [vmem:[#allocation4 + $0xc18] sm:$0xff]  ;;  %v624_v28 = vld [vmem:[#allocation4 + $0xa10] sm:$0xff] }
 0x11a   : > { %1180 = vmatprep.subr.mxu1 %v681_v30  ;;  %1114 = vmatpush2.msra.mxu0 %v544_v31  ;;  %v688_v29 = vld [vmem:[#allocation4 + $0xc10] sm:$0xff]  ;;  %v1323_v30 = vld [vmem:[#allocation7 + $0xf8] sm:$0xff] }
 0x11b   : > { %1181 = vmatpush2.msra.mxu1 %v680_v32  ;;  %1115 = vmatprep.subr.mxu0 %v541_v33  ;;  %v1307_v31 = vld [vmem:[#allocation7 + $0x78] sm:$0xff]  ;;  %v1322_v33 = vld [vmem:[#allocation7 + $0xf0] sm:$0xff] }
 0x11c   : > { %1182 = vmatprep.subr.mxu1 %v677_v63  ;;  %1116 = vmatpush2.msra.mxu0 %v540_v34  ;;  %v1786_v32 = vld [vmem:[%s2134_s17 + $0x30] sm:$0xff]  ;;  %v1321_v34 = vld [vmem:[#allocation7 + $0xe8] sm:$0xff] }
 0x11d   : > { %1183 = vmatpush2.msra.mxu1 %v676_v2  ;;  %1117 = vmatprep.subr.mxu0 %v537_v35  ;;  %v1306_v63 = vld [vmem:[#allocation7 + $0x70] sm:$0xff]  ;;  %v1355_v2 = vld [vmem:[#allocation7 + $0x1f8] sm:$0xff] }
 0x11e   : > { %1184 = vmatprep.subr.mxu1 %v673_v36  ;;  %1118 = vmatpush2.msra.mxu0 %v536_v37  ;;  %v1339_v35 = vld [vmem:[#allocation7 + $0x178] sm:$0xff]  ;;  %v1354_v36 = vld [vmem:[#allocation7 + $0x1f0] sm:$0xff] }
 0x11f   : > { %1185 = vmatpush2.msra.mxu1 %v672_v38  ;;  %1119 = vmatprep.subr.mxu0 %v533_v39  ;;  %v1338_v37 = vld [vmem:[#allocation7 + $0x170] sm:$0xff]  ;;  %v1353_v38 = vld [vmem:[#allocation7 + $0x1e8] sm:$0xff] }
 0x120   : > { %1186 = vmatprep.subr.mxu1 %v669_v40  ;;  %1120 = vmatpush2.msra.mxu0 %v532_v41  ;;  %v1337_v39 = vld [vmem:[#allocation7 + $0x168] sm:$0xff]  ;;  %v1319_v40 = vld [vmem:[#allocation7 + $0xd8] sm:$0xff]  ;;  %v1352_v41 = vld [vmem:[#allocation7 + $0x1e0] sm:$0xff] }
 0x121   : > { %1187 = vmatpush2.msra.mxu1 %v668_v42  ;;  %1121 = vmatprep.subr.mxu0 %v529_v43  ;;  %v1303_v42 = vld [vmem:[#allocation7 + $0x58] sm:$0xff]  ;;  %v1336_v43 = vld [vmem:[#allocation7 + $0x160] sm:$0xff] }
 0x122   : > { %1188 = vmatprep.subr.mxu1 %v665_v44  ;;  %1122 = vmatpush2.msra.mxu0 %v528_v45  ;;  %v1318_v44 = vld [vmem:[#allocation7 + $0xd0] sm:$0xff]  ;;  %v1351_v45 = vld [vmem:[#allocation7 + $0x1d8] sm:$0xff] }
 0x123   : > { %1189 = vmatpush2.msra.mxu1 %v664_v46  ;;  %1123 = vmatprep.subr.mxu0 %v525_v47  ;;  %v1302_v46 = vld [vmem:[#allocation7 + $0x50] sm:$0xff]  ;;  %v1335_v47 = vld [vmem:[#allocation7 + $0x158] sm:$0xff] }
 0x124   : > { %1190 = vmatprep.subr.mxu1 %v661_v48  ;;  %1124 = vmatpush2.msra.mxu0 %v524_v49  ;;  %v1317_v48 = vld [vmem:[#allocation7 + $0xc8] sm:$0xff]  ;;  %v1350_v49 = vld [vmem:[#allocation7 + $0x1d0] sm:$0xff] }
 0x125   : > { %1191 = vmatpush2.msra.mxu1 %v660_v50  ;;  %1125 = vmatprep.subr.mxu0 %v521_v51  ;;  %v1301_v50 = vld [vmem:[#allocation7 + $0x48] sm:$0xff]  ;;  %v1334_v51 = vld [vmem:[#allocation7 + $0x150] sm:$0xff] }
 0x126   : > { %1192 = vmatprep.subr.mxu1 %v657_v52  ;;  %1126 = vmatpush2.msra.mxu0 %v520_v53  ;;  %v1316_v52 = vld [vmem:[#allocation7 + $0xc0] sm:$0xff]  ;;  %v1349_v53 = vld [vmem:[#allocation7 + $0x1c8] sm:$0xff] }
 0x127   : > { %1193 = vmatpush2.msra.mxu1 %v656_v54  ;;  %1127 = vmatprep.subr.mxu0 %v517_v55  ;;  %v1300_v54 = vld [vmem:[#allocation7 + $0x40] sm:$0xff]  ;;  %v1333_v55 = vld [vmem:[#allocation7 + $0x148] sm:$0xff] }
 0x128   : > { %1194 = vmatprep.subr.mxu1 %v653_v56  ;;  %1128 = vmatpush2.msra.mxu0 %v516_v57  ;;  %v1315_v56 = vld [vmem:[#allocation7 + $0xb8] sm:$0xff]  ;;  %v1348_v57 = vld [vmem:[#allocation7 + $0x1c0] sm:$0xff] }
 0x129   : > { %1195 = vmatpush2.msra.mxu1 %v652_v58  ;;  %1129 = vmatprep.subr.mxu0 %v513_v59  ;;  %v1299_v58 = vld [vmem:[#allocation7 + $0x38] sm:$0xff]  ;;  %v1332_v59 = vld [vmem:[#allocation7 + $0x140] sm:$0xff] }
 0x12a   : > { %1196 = vmatprep.subr.mxu1 %v649_v60  ;;  %1130 = vmatpush2.msra.mxu0 %v512_v61  ;;  %v1314_v60 = vld [vmem:[#allocation7 + $0xb0] sm:$0xff]  ;;  %v1347_v61 = vld [vmem:[#allocation7 + $0x1b8] sm:$0xff] }
 0x12b   : > { %1197 = vmatpush2.msra.mxu1 %v648_v62  ;;  %1131 = vmatprep.subr.mxu0 %v509_v0  ;;  %v1298_v62 = vld [vmem:[#allocation7 + $0x30] sm:$0xff]  ;;  %v1331_v0 = vld [vmem:[#allocation7 + $0x138] sm:$0xff] }
 0x12c   : > { %1198 = vmatprep.subr.mxu1 %v645_v1  ;;  %1132 = vmatpush2.msra.mxu0 %v508_v3  ;;  %v1313_v1 = vld [vmem:[#allocation7 + $0xa8] sm:$0xff] }
 0x12d   : > { %1199 = vmatpush2.msra.mxu1 %v644_v4  ;;  %1133 = vmatprep.subr.mxu0 %v505_v5  ;;  %v1297_v3 = vld [vmem:[#allocation7 + $0x28] sm:$0xff]  ;;  %v1312_v4 = vld [vmem:[#allocation7 + $0xa0] sm:$0xff] }
 0x12e   : > { %1200 = vmatprep.subr.mxu1 %v641_v6  ;;  %1134 = vmatpush2.msra.mxu0 %v504_v7  ;;  %v1296_v5 = vld [vmem:[#allocation7 + $0x20] sm:$0xff]  ;;  %v1311_v6 = vld [vmem:[#allocation7 + $0x98] sm:$0xff] }
 0x12f   : > { %1201 = vmatpush2.msra.mxu1 %v640_v8  ;;  %1135 = vmatprep.subr.mxu0 %v501_v9  ;;  %v1295_v7 = vld [vmem:[#allocation7 + $0x18] sm:$0xff]  ;;  %v1310_v8 = vld [vmem:[#allocation7 + $0x90] sm:$0xff] }
 0x130   : > { %1202 = vmatprep.subr.mxu1 %v637_v11  ;;  %1136 = vmatpush2.msra.mxu0 %v500_v13  ;;  %v1294_v9 = vld [vmem:[#allocation7 + $0x10] sm:$0xff]  ;;  %v1309_v11 = vld [vmem:[#allocation7 + $0x88] sm:$0xff] }
 0x131   : > { %1203 = vmatpush2.msra.mxu1 %v636_v14  ;;  %1137 = vmatprep.subr.mxu0 %v497_v15  ;;  %v1293_v13 = vld [vmem:[#allocation7 + $0x8] sm:$0xff]  ;;  %v1308_v14 = vld [vmem:[#allocation7 + $0x80] sm:$0xff] }
 0x132   : > { %1204 = vmatprep.subr.mxu1 %v633_v16  ;;  %1138 = vmatpush2.msra.mxu0 %v496_v18  ;;  %v1292_v15 = vld [vmem:[#allocation7] sm:$0xff]  ;;  %v1346_v16 = vld [vmem:[#allocation7 + $0x1b0] sm:$0xff] }
 0x133   : > { %1139 = vmatprep.mubr.f32.mxu0 %v1784_v22  ;;  %1205 = vmatpush2.msra.mxu1 %v632_v19  ;;  %v1330_v18 = vld [vmem:[#allocation7 + $0x130] sm:$0xff]  ;;  %v1345_v19 = vld [vmem:[#allocation7 + $0x1a8] sm:$0xff]  ;;  %v1328_v22 = vld [vmem:[#allocation7 + $0x120] sm:$0xff] }
 0x134   : > { %1140 = vmatmul.mubr.f32.vlgmr.msra.gmra.mxu0 %v1785_v25  ;;  %1206 = vmatprep.subr.mxu1 %v629_v20  ;;  %v1329_v20 = vld [vmem:[#allocation7 + $0x128] sm:$0xff]  ;;  %v1342_v25 = vld [vmem:[#allocation7 + $0x190] sm:$0xff] }
 0x135   : > { %1245 = vmatprep.subr.mxu0 %v693_v21  ;;  %1207 = vmatpush2.msra.mxu1 %v628_v23  ;;  %v1344_v21 = vld [vmem:[#allocation7 + $0x1a0] sm:$0xff]  ;;  %v1343_v23 = vld [vmem:[#allocation7 + $0x198] sm:$0xff] }
 0x136   : > { %1246 = vmatpush1.msra.mxu0 %v692_v24  ;;  %1208 = vmatprep.subr.mxu1 %v625_v26  ;;  %v1327_v24 = vld [vmem:[#allocation7 + $0x118] sm:$0xff]  ;;  %v1326_v26 = vld [vmem:[#allocation7 + $0x110] sm:$0xff] }
 0x137   : > { %1247 = vmatprep.subr.mxu0 %v689_v27  ;;  %1209 = vmatpush2.msra.mxu1 %v624_v28  ;;  %v1341_v27 = vld [vmem:[#allocation7 + $0x188] sm:$0xff] }
 0x138   : > { %1210 = vmatprep.mubr.f32.mxu1 %v2162_v10  ;;  %1248 = vmatpush1.msra.mxu0 %v688_v29  ;;  %v1305_v10 = vld [vmem:[#allocation7 + $0x68] sm:$0xff]  ;;  %v1340_v29 = vld [vmem:[#allocation7 + $0x180] sm:$0xff] }
 0x139   : > { %1281 = vmatprep.mubr.f32.mxu0 %v1972_v17  ;;  %1211 = vmatmul.mubr.f32.vlgmr.msra.gmra.mxu1 %v2165_v12  ;;  %v1320_v17 = vld [vmem:[#allocation7 + $0xe0] sm:$0xff]  ;;  %v1325_v28 = vld [vmem:[#allocation7 + $0x108] sm:$0xff] }
 0x13a   : > { %1622 = vmatmul.mubr.msk.f32.vlgmr.msra.gmra.mxu0 %vm716_vm0, %v1786_v32  ;;  %1626 = vmatprep.subr.mxu0 %v1323_v30  ;;  %v1304_v12 = vld [vmem:[#allocation7 + $0x60] sm:$0xff] }
 0x13b   : > { %1627 = vmatpush3.msra.mxu0 %v1307_v31  ;;  %1661 = vmatprep.subr.mxu1 %v1355_v2  ;;  %v1324_v30 = vld [vmem:[#allocation7 + $0x100] sm:$0xff]  ;;  %v696_v31 = vlaneseq }
 0x13c   : > { %1628 = vmatprep.subr.mxu0 %v1322_v33  ;;  %1662 = vmatpush3.msra.mxu1 %v1339_v35 }
 0x13d   : > { %1629 = vmatpush3.msra.mxu0 %v1306_v63  ;;  %1663 = vmatprep.subr.mxu1 %v1354_v36  ;;  %v697_v32 = vshrl.u32 %v696_v31, 7  ;;  %v694_v63 = vld [vmem:[#allocation6] sm:$0xf] }
 0x13e   : > { %1630 = vmatprep.subr.mxu0 %v1321_v34  ;;  %1664 = vmatpush3.msra.mxu1 %v1338_v37 }
 0x13f   : > { %1631 = vmatpush3.msra.mxu0 %v1305_v10  ;;  %1665 = vmatprep.subr.mxu1 %v1353_v38  ;;  %v698_v33 = vsub.s32 0, %v697_v32  ;;  %v702_v34 = vsub.s32 1, %v697_v32 }
 0x140   : > { %1632 = vmatprep.subr.mxu0 %v1320_v17  ;;  %1666 = vmatpush3.msra.mxu1 %v1337_v39 }
 0x141   : > { %1633 = vmatpush3.msra.mxu0 %v1304_v12  ;;  %1667 = vmatprep.subr.mxu1 %v1352_v41  ;;  %v699_v35 = vrot.slane %v694_v63, %v698_v33  ;;  %v703_v10 = vrot.slane %v694_v63, %v702_v34 }
 0x142   : > { %1634 = vmatprep.subr.mxu0 %v1319_v40  ;;  %1668 = vmatpush3.msra.mxu1 %v1336_v43 }
 0x143   : > { %1635 = vmatpush3.msra.mxu0 %v1303_v42  ;;  %1669 = vmatprep.subr.mxu1 %v1351_v45 }
 0x144   : > { %1636 = vmatprep.subr.mxu0 %v1318_v44  ;;  %1670 = vmatpush3.msra.mxu1 %v1335_v47 }
 0x145   : > { %1637 = vmatpush3.msra.mxu0 %v1302_v46  ;;  %1671 = vmatprep.subr.mxu1 %v1350_v49 }
 0x146   : > { %1638 = vmatprep.subr.mxu0 %v1317_v48  ;;  %1672 = vmatpush3.msra.mxu1 %v1334_v51  ;;  %v706_v51 = vsub.s32 2, %v697_v32 }
 0x147   : > { %1639 = vmatpush3.msra.mxu0 %v1301_v50  ;;  %1673 = vmatprep.subr.mxu1 %v1349_v53 }
 0x148   : > { %1640 = vmatprep.subr.mxu0 %v1316_v52  ;;  %1674 = vmatpush3.msra.mxu1 %v1333_v55  ;;  %v710_v52 = vsub.s32 3, %v697_v32 }
 0x149   : > { %1641 = vmatpush3.msra.mxu0 %v1300_v54  ;;  %1675 = vmatprep.subr.mxu1 %v1348_v57  ;;  %v707_v54 = vrot.slane %v694_v63, %v706_v51 }
 0x14a   : > { %1642 = vmatprep.subr.mxu0 %v1315_v56  ;;  %1676 = vmatpush3.msra.mxu1 %v1332_v59  ;;  %v711_v56 = vrot.slane %v694_v63, %v710_v52 }
 0x14b   : > { %1643 = vmatpush3.msra.mxu0 %v1299_v58  ;;  %1677 = vmatprep.subr.mxu1 %v1347_v61 }
 0x14c   : > { %1644 = vmatprep.subr.mxu0 %v1314_v60  ;;  %1678 = vmatpush3.msra.mxu1 %v1331_v0 }
 0x14d   : > { %1645 = vmatpush3.msra.mxu0 %v1298_v62  ;;  %1679 = vmatprep.subr.mxu1 %v1346_v16  ;;  %v1623_v16 = vld [vmem:[#allocation9] ss:$0 sm:$0xff] }
 0x14e   : > { %1646 = vmatprep.subr.mxu0 %v1313_v1  ;;  %1680 = vmatpush3.msra.mxu1 %v1330_v18 }
 0x14f   : > { %1647 = vmatpush3.msra.mxu0 %v1297_v3  ;;  %1681 = vmatprep.subr.mxu1 %v1345_v19 }
 0x150   : > { %1648 = vmatprep.subr.mxu0 %v1312_v4  ;;  %1682 = vmatpush3.msra.mxu1 %v1329_v20 }
 0x151   : > { %1649 = vmatpush3.msra.mxu0 %v1296_v5  ;;  %1683 = vmatprep.subr.mxu1 %v1344_v21 }
 0x152   : > { %1650 = vmatprep.subr.mxu0 %v1311_v6  ;;  %1684 = vmatpush3.msra.mxu1 %v1328_v22 }
 0x153   : > { %1651 = vmatpush3.msra.mxu0 %v1295_v7  ;;  %1685 = vmatprep.subr.mxu1 %v1343_v23 }
 0x154   : > { %1652 = vmatprep.subr.mxu0 %v1310_v8  ;;  %1686 = vmatpush3.msra.mxu1 %v1327_v24 }
 0x155   : > { %1653 = vmatpush3.msra.mxu0 %v1294_v9  ;;  %1687 = vmatprep.subr.mxu1 %v1342_v25 }
 0x156   : > { %1654 = vmatprep.subr.mxu0 %v1309_v11  ;;  %1688 = vmatpush3.msra.mxu1 %v1326_v26 }
 0x157   : > { %1655 = vmatpush3.msra.mxu0 %v1293_v13  ;;  %1689 = vmatprep.subr.mxu1 %v1341_v27 }
 0x158   : > { %1656 = vmatprep.subr.mxu0 %v1308_v14  ;;  %1690 = vmatpush3.msra.mxu1 %v1325_v28 }
 0x159   : > { %1657 = vmatpush3.msra.mxu0 %v1292_v15  ;;  %1691 = vmatprep.subr.mxu1 %v1340_v29 }
 0x15a   : > { %1692 = vmatpush3.msra.mxu1 %v1324_v30 }
 0x16f   : > { %v786_v2 = vpop.f32.mrf.mxu0 }
 0x170   : > { %v857_v36 = vpop.f32.mrf.mxu1  ;;  %v787_v17 = vadd.f32 %v786_v2, %v699_v35 }
 0x171   : > { %v788_v37 = vpop.f32.mrf.mxu0 }
 0x172   : > { %v859_v38 = vpop.f32.mrf.mxu1  ;;  %v789_v12 = vadd.f32 %v788_v37, %v703_v10  ;;  %v858_v39 = vadd.f32 %v857_v36, %v787_v17 }
 0x174   : > { %v860_v42 = vadd.f32 %v859_v38, %v789_v12 }
 0x175   : > { %v999_v40 = vpop.f32.mrf.mxu1 }
 0x177   : > { %v1001_v46 = vpop.f32.mrf.mxu1 }
 0x1b2   : > { %v928_v41 = vpop.f32.mrf.mxu0 }
 0x1b3   : > { %v929_v43 = vadd.f32 %v928_v41, %v858_v39 }
 0x1b4   : > { %v930_v44 = vpop.f32.mrf.mxu0 }
 0x1b5   : > { %v931_v45 = vadd.f32 %v930_v44, %v860_v42  ;;  %v1000_v47 = vadd.f32 %v999_v40, %v929_v43 }
 0x1b7   : > { %v1002_v48 = vadd.f32 %v1001_v46, %v931_v45  ;;  %v1288_v50 = vmax.f32 %v1000_v47, 0.0  ;;  %v1070_v53 = vpop.f32.mrf.mxu1 }
 0x1b8   : > { %v1071_v59 = vadd.f32 %v1070_v53, %v707_v54 }
 0x1b9   : > { %v1289_v49 = vmax.f32 %v1002_v48, 0.0  ;;  %v1072_v57 = vpop.f32.mrf.mxu1 }
 0x1ba   : > { %v1073_v60 = vadd.f32 %v1072_v57, %v711_v56 }
 0x1bb   : > { %1427 = vmatprep.mubr.f32.mxu0 %v1289_v49 }
 0x1bc   : > { %1428 = vmatmul.mubr.f32.vlgmr.msra.gmra.mxu0 %v1288_v50 }
 0x1f4   : > { %v1141_v55 = vpop.f32.mrf.mxu0 }
 0x1f5   : > { %v1142_v61 = vadd.f32 %v1141_v55, %v1071_v59 }
 0x1f6   : > { %v1143_v58 = vpop.f32.mrf.mxu0 }
 0x1f7   : > { %v1144_v1 = vadd.f32 %v1143_v58, %v1073_v60 }
 0x1f9   : > { %v1212_v62 = vpop.f32.mrf.mxu1 }
 0x1fa   : > { %v1283_v0 = vpop.f32.mrf.mxu0  ;;  %v1213_v3 = vadd.f32 %v1212_v62, %v1142_v61 }
 0x1fb   : > { %v1214_v4 = vpop.f32.mrf.mxu1 }
 0x1fc   : > { %v1215_v5 = vadd.f32 %v1214_v4, %v1144_v1  ;;  %v1284_v6 = vadd.f32 %v1283_v0, %v1213_v3  ;;  %v1285_v7 = vpop.f32.mrf.mxu0 }
 0x1fe   : > { %v1286_v8 = vadd.f32 %v1285_v7, %v1215_v5  ;;  %v1290_v11 = vmax.f32 %v1284_v6, 0.0 }
 0x200   : > { %v1291_v9 = vmax.f32 %v1286_v8, 0.0 }
 0x202   : > { %1497 = vmatprep.mubr.f32.mxu1 %v1291_v9 }
 0x203   : > { %1498 = vmatmul.mubr.f32.vlgmr.msra.gmra.mxu1 %v1290_v11 }
 0x27c   : > { %v1658_v13 = vpop.f32.mrf.mxu0 }
 0x27e   : > { %v1659_v14 = vpop.f32.mrf.mxu0 }
 0x27f   : > { %v1660_v15 = vadd.f32 %v1659_v14, %v1658_v13 }
 0x281   : > { %v1430_v20 = vadd.f32 %v1660_v15, %v1623_v16 }
 0x2c3   : > { %v1693_v18 = vpop.f32.mrf.mxu1 }
 0x2c5   : > { %v1694_v19 = vpop.f32.mrf.mxu1 }
 0x2c6   : > { %v1695_v21 = vadd.f32 %v1694_v19, %v1693_v18 }
 0x2c8   : > { %v1500_v22 = vadd.f32 %v1695_v21, %v1430_v20 }
 0x2ca   : > { %1503 = vst [vmem:[%s294_s18] sm:$0xff] %v1500_v22 }
 0x2cb PF: > { %p17_p2 = scmp.ge.s32.totalorder %s2086_s30, 4   ;;  %s2215_s18 = smov %s1953_s19 }
 0x2cc   : > { %s2216_s19 = smov %s1957_s20  ;;  %s2217_s20 = smov %s2098_s9 }
 0x2cd   : > { %s2218_s21 = smov %s2086_s30  ;;  %19 = sbr.rel (!%p17_p2) target bundleno = 5 (0x5), region = 96 }
 0x2d2   :  { %1523 = vsyncpa [#allocation3], 1 }
 0x2d3   :  { %1525 = vsyncpa [#allocation3 + $0x1], 1 }
 0x2d4   :  { %1526 = vsyncpa [#allocation5], 1 }
 0x2d5   :  { %1527 = vsyncpa [#allocation8], 1 }

</bundles_post_ra>
